<compile_context>
chip_gen: v7x
topology: tpu7x:2x2x1
jax: 0.10.0
libtpu: 0.0.40
codegen_flags: <defaults>
</compile_context>

<pallas_src>
import functools

import numpy as np
import jax
import jax.numpy as jnp
from jax import lax
from jax.experimental import pallas as pl
from jax.experimental.pallas import tpu as pltpu

EPS = 1e-5  # nn.BatchNorm2d default


def _residual_block_kernel(x_ref, mask_ref,
                           w1_ref, b1_ref, g1_ref, be1_ref,
                           w2_ref, b2_ref, g2_ref, be2_ref,
                           o_ref, halo_ref, patch_ref,
                           *, P, W, Cp, halo):
    inv_m = 1.0 / float(P)

    # Zero only the (lane-aligned) halo borders; the interior is always overwritten.
    zeros_halo = jnp.zeros((Cp, halo), jnp.float32)
    halo_ref[:, 0:halo] = zeros_halo
    halo_ref[:, halo + P:halo + P + halo] = zeros_halo

    def conv_bn(act, w_ref_, b_ref_, g_ref_, be_ref_):
        # --- im2col: copy act into the flat halo scratch (aligned store), then build the
        #     (9*Cp, P) patch matrix from shifted slices * boundary masks (aligned stores).
        halo_ref[:, halo:halo + P] = act
        for kh in range(3):
            for kw in range(3):
                t = kh * 3 + kw
                s = (kh - 1) * W + (kw - 1)
                tap = halo_ref[:, halo + s:halo + s + P]
                if s != 0:
                    tap = tap * mask_ref[t:t + 1, :]     # zero out h/w-boundary wraps
                patch_ref[t * Cp:(t + 1) * Cp, :] = tap
        # --- one MXU matmul does the whole 3x3 conv for all output channels.
        acc = jnp.dot(w_ref_[...], patch_ref[...],
                      preferred_element_type=jnp.float32,
                      precision=lax.Precision.HIGHEST)
        acc = acc + b_ref_[...]                          # conv bias (cancelled by BN mean)
        # --- training-mode batch-norm, one-pass sum / sum-of-squares statistics.
        s1 = jnp.sum(acc, axis=1, keepdims=True)         # (Cp, 1)
        s2 = jnp.sum(acc * acc, axis=1, keepdims=True)
        mu = s1 * inv_m
        var = s2 * inv_m - mu * mu
        inv_std = lax.rsqrt(var + EPS)
        return (acc - mu) * (inv_std * g_ref_[...]) + be_ref_[...]

    r = jnp.maximum(conv_bn(x_ref[...], w1_ref, b1_ref, g1_ref, be1_ref), 0.0)
    r = conv_bn(r, w2_ref, b2_ref, g2_ref, be2_ref)
    o_ref[...] = jnp.maximum(x_ref[...] + r, 0.0)        # residual add + ReLU, lane-dense


def residual_block(x, w1, b1, g1, be1, w2, b2, g2, be2):
    """x: (N, C, H, W) f32.  w*: (C, C, 3, 3).  b/g/be: (C,)."""
    N, C, H, W = x.shape
    P = N * H * W
    Cp = ((C + 7) // 8) * 8                    # pad channels to a full sublane tile
    halo = max(128, ((W + 1 + 127) // 128) * 128)
    assert halo >= W + 1

    # ---- host-side layout plumbing (present lane-dense, tile-aligned slabs) ----
    def prep_w(w):  # (C,C,3,3) -> (Cp, 9*Cp), index [co, t*Cp + ci]
        wt = jnp.transpose(w, (0, 2, 3, 1))               # [co, kh, kw, ci]
        wt = jnp.pad(wt, ((0, Cp - C), (0, 0), (0, 0), (0, Cp - C)))
        return wt.reshape(Cp, 9 * Cp)

    def prep_v(v):  # (C,) -> (Cp, 1)
        return jnp.pad(v, (0, Cp - C)).reshape(Cp, 1)

    x_flat = jnp.pad(x.transpose(1, 0, 2, 3).reshape(C, P), ((0, Cp - C), (0, 0)))

    # Precomputed boundary masks (constant index metadata), one row per 3x3 tap.
    pidx = np.arange(P)
    hh = (pidx // W) % H
    ww = pidx % W
    rows = []
    for kh in range(3):
        for kw in range(3):
            dh, dw = kh - 1, kw - 1
            valid = (hh + dh >= 0) & (hh + dh < H) & (ww + dw >= 0) & (ww + dw < W)
            rows.append(valid.astype(np.float32))
    mask = jnp.asarray(np.stack(rows, axis=0))            # (9, P)

    vmem = pl.BlockSpec(memory_space=pltpu.MemorySpace.VMEM)
    kernel = functools.partial(_residual_block_kernel, P=P, W=W, Cp=Cp, halo=halo)

    out_flat = pl.pallas_call(
        kernel,
        out_shape=jax.ShapeDtypeStruct((Cp, P), jnp.float32),
        in_specs=[vmem] * 10,
        out_specs=vmem,
        scratch_shapes=[pltpu.VMEM((Cp, P + 2 * halo), jnp.float32),   # flat halo buffer
                        pltpu.VMEM((9 * Cp, P), jnp.float32)],         # im2col patch matrix
    )(x_flat, mask,
      prep_w(w1), prep_v(b1), prep_v(g1), prep_v(be1),
      prep_w(w2), prep_v(b2), prep_v(g2), prep_v(be2))

    return out_flat[:C].reshape(C, N, H, W).transpose(1, 0, 2, 3)


def _jax_reference(x, w1, b1, g1, be1, w2, b2, g2, be2):
    def conv(x, w, b):
        y = lax.conv_general_dilated(
            x, w, window_strides=(1, 1), padding=((1, 1), (1, 1)),
            dimension_numbers=('NCHW', 'OIHW', 'NCHW'))
        return y + b[None, :, None, None]

    def bn(y, g, be):
        mu = jnp.mean(y, axis=(0, 2, 3), keepdims=True)
        var = jnp.mean((y - mu) ** 2, axis=(0, 2, 3), keepdims=True)
        return (y - mu) / jnp.sqrt(var + EPS) * g[None, :, None, None] \
            + be[None, :, None, None]

    r = jax.nn.relu(bn(conv(x, w1, b1), g1, be1))
    r = bn(conv(r, w2, b2), g2, be2)
    return jax.nn.relu(x + r)


if __name__ == "__main__":
    # Module only type-checks when in_channels == n_filters (BN1 sized by in_channels is
    # applied to conv1's n_filters output, and the residual add requires matching channels).
    N, C, H, W = 2, 4, 16, 16

    key = jax.random.PRNGKey(0)
    ks = jax.random.split(key, 9)
    x = jax.random.normal(ks[0], (N, C, H, W), jnp.float32)

    w1 = jax.random.normal(ks[1], (C, C, 3, 3), jnp.float32) * 0.1
    b1 = jax.random.normal(ks[2], (C,), jnp.float32) * 0.1
    g1 = 1.0 + 0.1 * jax.random.normal(ks[3], (C,), jnp.float32)
    be1 = jax.random.normal(ks[4], (C,), jnp.float32) * 0.1
    w2 = jax.random.normal(ks[5], (C, C, 3, 3), jnp.float32) * 0.1
    b2 = jax.random.normal(ks[6], (C,), jnp.float32) * 0.1
    g2 = 1.0 + 0.1 * jax.random.normal(ks[7], (C,), jnp.float32)
    be2 = jax.random.normal(ks[8], (C,), jnp.float32) * 0.1

    out = residual_block(x, w1, b1, g1, be1, w2, b2, g2, be2)
    out = jax.block_until_ready(out)

    ref = _jax_reference(x, w1, b1, g1, be1, w2, b2, g2, be2)
    assert out.shape == ref.shape
    assert jnp.allclose(out, ref, atol=1e-3, rtol=1e-3), \
        f"max abs err {jnp.max(jnp.abs(out - ref))}"

    print("KERNEL_OK")
</pallas_src>

<mosaic_0001>
module attributes {stable_mosaic.version = 11 : i64} {
  func.func @_residual_block_kernel(%arg0: memref<8x512xf32, #tpu.memory_space<vmem>>, %arg1: memref<9x512xf32, #tpu.memory_space<vmem>>, %arg2: memref<8x72xf32, #tpu.memory_space<vmem>>, %arg3: memref<8x1xf32, #tpu.memory_space<vmem>>, %arg4: memref<8x1xf32, #tpu.memory_space<vmem>>, %arg5: memref<8x1xf32, #tpu.memory_space<vmem>>, %arg6: memref<8x72xf32, #tpu.memory_space<vmem>>, %arg7: memref<8x1xf32, #tpu.memory_space<vmem>>, %arg8: memref<8x1xf32, #tpu.memory_space<vmem>>, %arg9: memref<8x1xf32, #tpu.memory_space<vmem>>, %arg10: memref<8x512xf32, #tpu.memory_space<vmem>>, %arg11: memref<8x768xf32, #tpu.memory_space<vmem>>, %arg12: memref<72x512xf32, #tpu.memory_space<vmem>>) attributes {dimension_semantics = [], scalar_prefetch = 0 : i64, scratch_operands = 2 : i64, tpu.core_type = #tpu.core_type<tc>} {
    %cst = arith.constant 0.000000e+00 : f32
    %0 = vector.broadcast %cst : f32 to vector<8x128xf32>
    %c0 = arith.constant 0 : index
    %c0_0 = arith.constant 0 : index
    %1 = vector.load %arg11[%c0, %c0_0] : memref<8x768xf32, #tpu.memory_space<vmem>>, vector<8x128xf32>
    tpu.vector_store %arg11[%c0, %c0_0], %0 {strides = array<i32>} : memref<8x768xf32, #tpu.memory_space<vmem>>, vector<8x128xf32>,
    %c0_1 = arith.constant 0 : index
    %c640 = arith.constant 640 : index
    %2 = vector.load %arg11[%c0_1, %c640] : memref<8x768xf32, #tpu.memory_space<vmem>>, vector<8x128xf32>
    tpu.vector_store %arg11[%c0_1, %c640], %0 {strides = array<i32>} : memref<8x768xf32, #tpu.memory_space<vmem>>, vector<8x128xf32>,
    %c0_2 = arith.constant 0 : index
    %c0_3 = arith.constant 0 : index
    %3 = vector.load %arg0[%c0_2, %c0_3] : memref<8x512xf32, #tpu.memory_space<vmem>>, vector<8x512xf32>
    %c0_4 = arith.constant 0 : index
    %c128 = arith.constant 128 : index
    %4 = vector.load %arg11[%c0_4, %c128] : memref<8x768xf32, #tpu.memory_space<vmem>>, vector<8x512xf32>
    tpu.vector_store %arg11[%c0_4, %c128], %3 {strides = array<i32>} : memref<8x768xf32, #tpu.memory_space<vmem>>, vector<8x512xf32>,
    %c0_5 = arith.constant 0 : index
    %c111 = arith.constant 111 : index
    %5 = vector.load %arg11[%c0_5, %c111] : memref<8x768xf32, #tpu.memory_space<vmem>>, vector<8x512xf32>
    %c0_6 = arith.constant 0 : index
    %c0_7 = arith.constant 0 : index
    %6 = vector.load %arg1[%c0_6, %c0_7] : memref<9x512xf32, #tpu.memory_space<vmem>>, vector<1x512xf32>
    %7 = vector.broadcast %6 : vector<1x512xf32> to vector<8x512xf32>
    %8 = arith.mulf %5, %7 : vector<8x512xf32>
    %c0_8 = arith.constant 0 : index
    %c0_9 = arith.constant 0 : index
    %9 = vector.load %arg12[%c0_8, %c0_9] : memref<72x512xf32, #tpu.memory_space<vmem>>, vector<8x512xf32>
    tpu.vector_store %arg12[%c0_8, %c0_9], %8 {strides = array<i32>} : memref<72x512xf32, #tpu.memory_space<vmem>>, vector<8x512xf32>,
    %c0_10 = arith.constant 0 : index
    %c112 = arith.constant 112 : index
    %10 = vector.load %arg11[%c0_10, %c112] : memref<8x768xf32, #tpu.memory_space<vmem>>, vector<8x512xf32>
    %c1 = arith.constant 1 : index
    %c0_11 = arith.constant 0 : index
    %11 = vector.load %arg1[%c1, %c0_11] : memref<9x512xf32, #tpu.memory_space<vmem>>, vector<1x512xf32>
    %12 = vector.broadcast %11 : vector<1x512xf32> to vector<8x512xf32>
    %13 = arith.mulf %10, %12 : vector<8x512xf32>
    %c8 = arith.constant 8 : index
    %c0_12 = arith.constant 0 : index
    %14 = vector.load %arg12[%c8, %c0_12] : memref<72x512xf32, #tpu.memory_space<vmem>>, vector<8x512xf32>
    tpu.vector_store %arg12[%c8, %c0_12], %13 {strides = array<i32>} : memref<72x512xf32, #tpu.memory_space<vmem>>, vector<8x512xf32>,
    %c0_13 = arith.constant 0 : index
    %c113 = arith.constant 113 : index
    %15 = vector.load %arg11[%c0_13, %c113] : memref<8x768xf32, #tpu.memory_space<vmem>>, vector<8x512xf32>
    %c2 = arith.constant 2 : index
    %c0_14 = arith.constant 0 : index
    %16 = vector.load %arg1[%c2, %c0_14] : memref<9x512xf32, #tpu.memory_space<vmem>>, vector<1x512xf32>
    %17 = vector.broadcast %16 : vector<1x512xf32> to vector<8x512xf32>
    %18 = arith.mulf %15, %17 : vector<8x512xf32>
    %c16 = arith.constant 16 : index
    %c0_15 = arith.constant 0 : index
    %19 = vector.load %arg12[%c16, %c0_15] : memref<72x512xf32, #tpu.memory_space<vmem>>, vector<8x512xf32>
    tpu.vector_store %arg12[%c16, %c0_15], %18 {strides = array<i32>} : memref<72x512xf32, #tpu.memory_space<vmem>>, vector<8x512xf32>,
    %c0_16 = arith.constant 0 : index
    %c127 = arith.constant 127 : index
    %20 = vector.load %arg11[%c0_16, %c127] : memref<8x768xf32, #tpu.memory_space<vmem>>, vector<8x512xf32>
    %c3 = arith.constant 3 : index
    %c0_17 = arith.constant 0 : index
    %21 = vector.load %arg1[%c3, %c0_17] : memref<9x512xf32, #tpu.memory_space<vmem>>, vector<1x512xf32>
    %22 = vector.broadcast %21 : vector<1x512xf32> to vector<8x512xf32>
    %23 = arith.mulf %20, %22 : vector<8x512xf32>
    %c24 = arith.constant 24 : index
    %c0_18 = arith.constant 0 : index
    %24 = vector.load %arg12[%c24, %c0_18] : memref<72x512xf32, #tpu.memory_space<vmem>>, vector<8x512xf32>
    tpu.vector_store %arg12[%c24, %c0_18], %23 {strides = array<i32>} : memref<72x512xf32, #tpu.memory_space<vmem>>, vector<8x512xf32>,
    %c0_19 = arith.constant 0 : index
    %c128_20 = arith.constant 128 : index
    %25 = vector.load %arg11[%c0_19, %c128_20] : memref<8x768xf32, #tpu.memory_space<vmem>>, vector<8x512xf32>
    %c32 = arith.constant 32 : index
    %c0_21 = arith.constant 0 : index
    %26 = vector.load %arg12[%c32, %c0_21] : memref<72x512xf32, #tpu.memory_space<vmem>>, vector<8x512xf32>
    tpu.vector_store %arg12[%c32, %c0_21], %25 {strides = array<i32>} : memref<72x512xf32, #tpu.memory_space<vmem>>, vector<8x512xf32>,
    %c0_22 = arith.constant 0 : index
    %c129 = arith.constant 129 : index
    %27 = vector.load %arg11[%c0_22, %c129] : memref<8x768xf32, #tpu.memory_space<vmem>>, vector<8x512xf32>
    %c5 = arith.constant 5 : index
    %c0_23 = arith.constant 0 : index
    %28 = vector.load %arg1[%c5, %c0_23] : memref<9x512xf32, #tpu.memory_space<vmem>>, vector<1x512xf32>
    %29 = vector.broadcast %28 : vector<1x512xf32> to vector<8x512xf32>
    %30 = arith.mulf %27, %29 : vector<8x512xf32>
    %c40 = arith.constant 40 : index
    %c0_24 = arith.constant 0 : index
    %31 = vector.load %arg12[%c40, %c0_24] : memref<72x512xf32, #tpu.memory_space<vmem>>, vector<8x512xf32>
    tpu.vector_store %arg12[%c40, %c0_24], %30 {strides = array<i32>} : memref<72x512xf32, #tpu.memory_space<vmem>>, vector<8x512xf32>,
    %c0_25 = arith.constant 0 : index
    %c143 = arith.constant 143 : index
    %32 = vector.load %arg11[%c0_25, %c143] : memref<8x768xf32, #tpu.memory_space<vmem>>, vector<8x512xf32>
    %c6 = arith.constant 6 : index
    %c0_26 = arith.constant 0 : index
    %33 = vector.load %arg1[%c6, %c0_26] : memref<9x512xf32, #tpu.memory_space<vmem>>, vector<1x512xf32>
    %34 = vector.broadcast %33 : vector<1x512xf32> to vector<8x512xf32>
    %35 = arith.mulf %32, %34 : vector<8x512xf32>
    %c48 = arith.constant 48 : index
    %c0_27 = arith.constant 0 : index
    %36 = vector.load %arg12[%c48, %c0_27] : memref<72x512xf32, #tpu.memory_space<vmem>>, vector<8x512xf32>
    tpu.vector_store %arg12[%c48, %c0_27], %35 {strides = array<i32>} : memref<72x512xf32, #tpu.memory_space<vmem>>, vector<8x512xf32>,
    %c0_28 = arith.constant 0 : index
    %c144 = arith.constant 144 : index
    %37 = vector.load %arg11[%c0_28, %c144] : memref<8x768xf32, #tpu.memory_space<vmem>>, vector<8x512xf32>
    %c7 = arith.constant 7 : index
    %c0_29 = arith.constant 0 : index
    %38 = vector.load %arg1[%c7, %c0_29] : memref<9x512xf32, #tpu.memory_space<vmem>>, vector<1x512xf32>
    %39 = vector.broadcast %38 : vector<1x512xf32> to vector<8x512xf32>
    %40 = arith.mulf %37, %39 : vector<8x512xf32>
    %c56 = arith.constant 56 : index
    %c0_30 = arith.constant 0 : index
    %41 = vector.load %arg12[%c56, %c0_30] : memref<72x512xf32, #tpu.memory_space<vmem>>, vector<8x512xf32>
    tpu.vector_store %arg12[%c56, %c0_30], %40 {strides = array<i32>} : memref<72x512xf32, #tpu.memory_space<vmem>>, vector<8x512xf32>,
    %c0_31 = arith.constant 0 : index
    %c145 = arith.constant 145 : index
    %42 = vector.load %arg11[%c0_31, %c145] : memref<8x768xf32, #tpu.memory_space<vmem>>, vector<8x512xf32>
    %c8_32 = arith.constant 8 : index
    %c0_33 = arith.constant 0 : index
    %43 = vector.load %arg1[%c8_32, %c0_33] : memref<9x512xf32, #tpu.memory_space<vmem>>, vector<1x512xf32>
    %44 = vector.broadcast %43 : vector<1x512xf32> to vector<8x512xf32>
    %45 = arith.mulf %42, %44 : vector<8x512xf32>
    %c64 = arith.constant 64 : index
    %c0_34 = arith.constant 0 : index
    %46 = vector.load %arg12[%c64, %c0_34] : memref<72x512xf32, #tpu.memory_space<vmem>>, vector<8x512xf32>
    tpu.vector_store %arg12[%c64, %c0_34], %45 {strides = array<i32>} : memref<72x512xf32, #tpu.memory_space<vmem>>, vector<8x512xf32>,
    %c0_35 = arith.constant 0 : index
    %c0_36 = arith.constant 0 : index
    %47 = vector.load %arg2[%c0_35, %c0_36] : memref<8x72xf32, #tpu.memory_space<vmem>>, vector<8x72xf32>
    %c0_37 = arith.constant 0 : index
    %c0_38 = arith.constant 0 : index
    %48 = vector.load %arg12[%c0_37, %c0_38] : memref<72x512xf32, #tpu.memory_space<vmem>>, vector<72x512xf32>
    %cst_39 = arith.constant dense<0.000000e+00> : vector<8x512xf32>
    %49 = tpu.matmul %47, %48, %cst_39 {dimension_numbers = #tpu.dot_dimension_numbers<[1], [0], [0], [1], [0, 0, 1, 1], [], []>, precision = #tpu.contract_precision<fp32>} : vector<8x72xf32>, vector<72x512xf32>, vector<8x512xf32> -> vector<8x512xf32>
    %c0_40 = arith.constant 0 : index
    %c0_41 = arith.constant 0 : index
    %50 = vector.load %arg3[%c0_40, %c0_41] : memref<8x1xf32, #tpu.memory_space<vmem>>, vector<8x1xf32>
    %51 = vector.broadcast %50 : vector<8x1xf32> to vector<8x512xf32>
    %52 = arith.addf %49, %51 : vector<8x512xf32>
    %cst_42 = arith.constant dense<0.000000e+00> : vector<8xf32>
    %53 = vector.multi_reduction <add>, %52, %cst_42 [1] : vector<8x512xf32> to vector<8xf32>
    %54 = vector.shape_cast %53 : vector<8xf32> to vector<8x1xf32>
    %55 = arith.mulf %52, %52 : vector<8x512xf32>
    %cst_43 = arith.constant dense<0.000000e+00> : vector<8xf32>
    %56 = vector.multi_reduction <add>, %55, %cst_43 [1] : vector<8x512xf32> to vector<8xf32>
    %57 = vector.shape_cast %56 : vector<8xf32> to vector<8x1xf32>
    %cst_44 = arith.constant 0.001953125 : f32
    %58 = vector.broadcast %cst_44 : f32 to vector<8x1xf32>
    %59 = arith.mulf %54, %58 : vector<8x1xf32>
    %cst_45 = arith.constant 0.001953125 : f32
    %60 = vector.broadcast %cst_45 : f32 to vector<8x1xf32>
    %61 = arith.mulf %57, %60 : vector<8x1xf32>
    %62 = arith.mulf %59, %59 : vector<8x1xf32>
    %63 = arith.subf %61, %62 : vector<8x1xf32>
    %cst_46 = arith.constant 9.99999974E-6 : f32
    %64 = vector.broadcast %cst_46 : f32 to vector<8x1xf32>
    %65 = arith.addf %63, %64 : vector<8x1xf32>
    %66 = math.rsqrt %65 : vector<8x1xf32>
    %67 = vector.broadcast %59 : vector<8x1xf32> to vector<8x512xf32>
    %68 = arith.subf %52, %67 : vector<8x512xf32>
    %c0_47 = arith.constant 0 : index
    %c0_48 = arith.constant 0 : index
    %69 = vector.load %arg4[%c0_47, %c0_48] : memref<8x1xf32, #tpu.memory_space<vmem>>, vector<8x1xf32>
    %70 = arith.mulf %66, %69 : vector<8x1xf32>
    %71 = vector.broadcast %70 : vector<8x1xf32> to vector<8x512xf32>
    %72 = arith.mulf %68, %71 : vector<8x512xf32>
    %c0_49 = arith.constant 0 : index
    %c0_50 = arith.constant 0 : index
    %73 = vector.load %arg5[%c0_49, %c0_50] : memref<8x1xf32, #tpu.memory_space<vmem>>, vector<8x1xf32>
    %74 = vector.broadcast %73 : vector<8x1xf32> to vector<8x512xf32>
    %75 = arith.addf %72, %74 : vector<8x512xf32>
    %cst_51 = arith.constant 0.000000e+00 : f32
    %76 = vector.broadcast %cst_51 : f32 to vector<8x512xf32>
    %77 = arith.maximumf %75, %76 : vector<8x512xf32>
    %c0_52 = arith.constant 0 : index
    %c128_53 = arith.constant 128 : index
    %78 = vector.load %arg11[%c0_52, %c128_53] : memref<8x768xf32, #tpu.memory_space<vmem>>, vector<8x512xf32>
    tpu.vector_store %arg11[%c0_52, %c128_53], %77 {strides = array<i32>} : memref<8x768xf32, #tpu.memory_space<vmem>>, vector<8x512xf32>,
    %c0_54 = arith.constant 0 : index
    %c111_55 = arith.constant 111 : index
    %79 = vector.load %arg11[%c0_54, %c111_55] : memref<8x768xf32, #tpu.memory_space<vmem>>, vector<8x512xf32>
    %c0_56 = arith.constant 0 : index
    %c0_57 = arith.constant 0 : index
    %80 = vector.load %arg1[%c0_56, %c0_57] : memref<9x512xf32, #tpu.memory_space<vmem>>, vector<1x512xf32>
    %81 = vector.broadcast %80 : vector<1x512xf32> to vector<8x512xf32>
    %82 = arith.mulf %79, %81 : vector<8x512xf32>
    %c0_58 = arith.constant 0 : index
    %c0_59 = arith.constant 0 : index
    %83 = vector.load %arg12[%c0_58, %c0_59] : memref<72x512xf32, #tpu.memory_space<vmem>>, vector<8x512xf32>
    tpu.vector_store %arg12[%c0_58, %c0_59], %82 {strides = array<i32>} : memref<72x512xf32, #tpu.memory_space<vmem>>, vector<8x512xf32>,
    %c0_60 = arith.constant 0 : index
    %c112_61 = arith.constant 112 : index
    %84 = vector.load %arg11[%c0_60, %c112_61] : memref<8x768xf32, #tpu.memory_space<vmem>>, vector<8x512xf32>
    %c1_62 = arith.constant 1 : index
    %c0_63 = arith.constant 0 : index
    %85 = vector.load %arg1[%c1_62, %c0_63] : memref<9x512xf32, #tpu.memory_space<vmem>>, vector<1x512xf32>
    %86 = vector.broadcast %85 : vector<1x512xf32> to vector<8x512xf32>
    %87 = arith.mulf %84, %86 : vector<8x512xf32>
    %c8_64 = arith.constant 8 : index
    %c0_65 = arith.constant 0 : index
    %88 = vector.load %arg12[%c8_64, %c0_65] : memref<72x512xf32, #tpu.memory_space<vmem>>, vector<8x512xf32>
    tpu.vector_store %arg12[%c8_64, %c0_65], %87 {strides = array<i32>} : memref<72x512xf32, #tpu.memory_space<vmem>>, vector<8x512xf32>,
    %c0_66 = arith.constant 0 : index
    %c113_67 = arith.constant 113 : index
    %89 = vector.load %arg11[%c0_66, %c113_67] : memref<8x768xf32, #tpu.memory_space<vmem>>, vector<8x512xf32>
    %c2_68 = arith.constant 2 : index
    %c0_69 = arith.constant 0 : index
    %90 = vector.load %arg1[%c2_68, %c0_69] : memref<9x512xf32, #tpu.memory_space<vmem>>, vector<1x512xf32>
    %91 = vector.broadcast %90 : vector<1x512xf32> to vector<8x512xf32>
    %92 = arith.mulf %89, %91 : vector<8x512xf32>
    %c16_70 = arith.constant 16 : index
    %c0_71 = arith.constant 0 : index
    %93 = vector.load %arg12[%c16_70, %c0_71] : memref<72x512xf32, #tpu.memory_space<vmem>>, vector<8x512xf32>
    tpu.vector_store %arg12[%c16_70, %c0_71], %92 {strides = array<i32>} : memref<72x512xf32, #tpu.memory_space<vmem>>, vector<8x512xf32>,
    %c0_72 = arith.constant 0 : index
    %c127_73 = arith.constant 127 : index
    %94 = vector.load %arg11[%c0_72, %c127_73] : memref<8x768xf32, #tpu.memory_space<vmem>>, vector<8x512xf32>
    %c3_74 = arith.constant 3 : index
    %c0_75 = arith.constant 0 : index
    %95 = vector.load %arg1[%c3_74, %c0_75] : memref<9x512xf32, #tpu.memory_space<vmem>>, vector<1x512xf32>
    %96 = vector.broadcast %95 : vector<1x512xf32> to vector<8x512xf32>
    %97 = arith.mulf %94, %96 : vector<8x512xf32>
    %c24_76 = arith.constant 24 : index
    %c0_77 = arith.constant 0 : index
    %98 = vector.load %arg12[%c24_76, %c0_77] : memref<72x512xf32, #tpu.memory_space<vmem>>, vector<8x512xf32>
    tpu.vector_store %arg12[%c24_76, %c0_77], %97 {strides = array<i32>} : memref<72x512xf32, #tpu.memory_space<vmem>>, vector<8x512xf32>,
    %c0_78 = arith.constant 0 : index
    %c128_79 = arith.constant 128 : index
    %99 = vector.load %arg11[%c0_78, %c128_79] : memref<8x768xf32, #tpu.memory_space<vmem>>, vector<8x512xf32>
    %c32_80 = arith.constant 32 : index
    %c0_81 = arith.constant 0 : index
    %100 = vector.load %arg12[%c32_80, %c0_81] : memref<72x512xf32, #tpu.memory_space<vmem>>, vector<8x512xf32>
    tpu.vector_store %arg12[%c32_80, %c0_81], %99 {strides = array<i32>} : memref<72x512xf32, #tpu.memory_space<vmem>>, vector<8x512xf32>,
    %c0_82 = arith.constant 0 : index
    %c129_83 = arith.constant 129 : index
    %101 = vector.load %arg11[%c0_82, %c129_83] : memref<8x768xf32, #tpu.memory_space<vmem>>, vector<8x512xf32>
    %c5_84 = arith.constant 5 : index
    %c0_85 = arith.constant 0 : index
    %102 = vector.load %arg1[%c5_84, %c0_85] : memref<9x512xf32, #tpu.memory_space<vmem>>, vector<1x512xf32>
    %103 = vector.broadcast %102 : vector<1x512xf32> to vector<8x512xf32>
    %104 = arith.mulf %101, %103 : vector<8x512xf32>
    %c40_86 = arith.constant 40 : index
    %c0_87 = arith.constant 0 : index
    %105 = vector.load %arg12[%c40_86, %c0_87] : memref<72x512xf32, #tpu.memory_space<vmem>>, vector<8x512xf32>
    tpu.vector_store %arg12[%c40_86, %c0_87], %104 {strides = array<i32>} : memref<72x512xf32, #tpu.memory_space<vmem>>, vector<8x512xf32>,
    %c0_88 = arith.constant 0 : index
    %c143_89 = arith.constant 143 : index
    %106 = vector.load %arg11[%c0_88, %c143_89] : memref<8x768xf32, #tpu.memory_space<vmem>>, vector<8x512xf32>
    %c6_90 = arith.constant 6 : index
    %c0_91 = arith.constant 0 : index
    %107 = vector.load %arg1[%c6_90, %c0_91] : memref<9x512xf32, #tpu.memory_space<vmem>>, vector<1x512xf32>
    %108 = vector.broadcast %107 : vector<1x512xf32> to vector<8x512xf32>
    %109 = arith.mulf %106, %108 : vector<8x512xf32>
    %c48_92 = arith.constant 48 : index
    %c0_93 = arith.constant 0 : index
    %110 = vector.load %arg12[%c48_92, %c0_93] : memref<72x512xf32, #tpu.memory_space<vmem>>, vector<8x512xf32>
    tpu.vector_store %arg12[%c48_92, %c0_93], %109 {strides = array<i32>} : memref<72x512xf32, #tpu.memory_space<vmem>>, vector<8x512xf32>,
    %c0_94 = arith.constant 0 : index
    %c144_95 = arith.constant 144 : index
    %111 = vector.load %arg11[%c0_94, %c144_95] : memref<8x768xf32, #tpu.memory_space<vmem>>, vector<8x512xf32>
    %c7_96 = arith.constant 7 : index
    %c0_97 = arith.constant 0 : index
    %112 = vector.load %arg1[%c7_96, %c0_97] : memref<9x512xf32, #tpu.memory_space<vmem>>, vector<1x512xf32>
    %113 = vector.broadcast %112 : vector<1x512xf32> to vector<8x512xf32>
    %114 = arith.mulf %111, %113 : vector<8x512xf32>
    %c56_98 = arith.constant 56 : index
    %c0_99 = arith.constant 0 : index
    %115 = vector.load %arg12[%c56_98, %c0_99] : memref<72x512xf32, #tpu.memory_space<vmem>>, vector<8x512xf32>
    tpu.vector_store %arg12[%c56_98, %c0_99], %114 {strides = array<i32>} : memref<72x512xf32, #tpu.memory_space<vmem>>, vector<8x512xf32>,
    %c0_100 = arith.constant 0 : index
    %c145_101 = arith.constant 145 : index
    %116 = vector.load %arg11[%c0_100, %c145_101] : memref<8x768xf32, #tpu.memory_space<vmem>>, vector<8x512xf32>
    %c8_102 = arith.constant 8 : index
    %c0_103 = arith.constant 0 : index
    %117 = vector.load %arg1[%c8_102, %c0_103] : memref<9x512xf32, #tpu.memory_space<vmem>>, vector<1x512xf32>
    %118 = vector.broadcast %117 : vector<1x512xf32> to vector<8x512xf32>
    %119 = arith.mulf %116, %118 : vector<8x512xf32>
    %c64_104 = arith.constant 64 : index
    %c0_105 = arith.constant 0 : index
    %120 = vector.load %arg12[%c64_104, %c0_105] : memref<72x512xf32, #tpu.memory_space<vmem>>, vector<8x512xf32>
    tpu.vector_store %arg12[%c64_104, %c0_105], %119 {strides = array<i32>} : memref<72x512xf32, #tpu.memory_space<vmem>>, vector<8x512xf32>,
    %c0_106 = arith.constant 0 : index
    %c0_107 = arith.constant 0 : index
    %121 = vector.load %arg6[%c0_106, %c0_107] : memref<8x72xf32, #tpu.memory_space<vmem>>, vector<8x72xf32>
    %c0_108 = arith.constant 0 : index
    %c0_109 = arith.constant 0 : index
    %122 = vector.load %arg12[%c0_108, %c0_109] : memref<72x512xf32, #tpu.memory_space<vmem>>, vector<72x512xf32>
    %cst_110 = arith.constant dense<0.000000e+00> : vector<8x512xf32>
    %123 = tpu.matmul %121, %122, %cst_110 {dimension_numbers = #tpu.dot_dimension_numbers<[1], [0], [0], [1], [0, 0, 1, 1], [], []>, precision = #tpu.contract_precision<fp32>} : vector<8x72xf32>, vector<72x512xf32>, vector<8x512xf32> -> vector<8x512xf32>
    %c0_111 = arith.constant 0 : index
    %c0_112 = arith.constant 0 : index
    %124 = vector.load %arg7[%c0_111, %c0_112] : memref<8x1xf32, #tpu.memory_space<vmem>>, vector<8x1xf32>
    %125 = vector.broadcast %124 : vector<8x1xf32> to vector<8x512xf32>
    %126 = arith.addf %123, %125 : vector<8x512xf32>
    %cst_113 = arith.constant dense<0.000000e+00> : vector<8xf32>
    %127 = vector.multi_reduction <add>, %126, %cst_113 [1] : vector<8x512xf32> to vector<8xf32>
    %128 = vector.shape_cast %127 : vector<8xf32> to vector<8x1xf32>
    %129 = arith.mulf %126, %126 : vector<8x512xf32>
    %cst_114 = arith.constant dense<0.000000e+00> : vector<8xf32>
    %130 = vector.multi_reduction <add>, %129, %cst_114 [1] : vector<8x512xf32> to vector<8xf32>
    %131 = vector.shape_cast %130 : vector<8xf32> to vector<8x1xf32>
    %cst_115 = arith.constant 0.001953125 : f32
    %132 = vector.broadcast %cst_115 : f32 to vector<8x1xf32>
    %133 = arith.mulf %128, %132 : vector<8x1xf32>
    %cst_116 = arith.constant 0.001953125 : f32
    %134 = vector.broadcast %cst_116 : f32 to vector<8x1xf32>
    %135 = arith.mulf %131, %134 : vector<8x1xf32>
    %136 = arith.mulf %133, %133 : vector<8x1xf32>
    %137 = arith.subf %135, %136 : vector<8x1xf32>
    %cst_117 = arith.constant 9.99999974E-6 : f32
    %138 = vector.broadcast %cst_117 : f32 to vector<8x1xf32>
    %139 = arith.addf %137, %138 : vector<8x1xf32>
    %140 = math.rsqrt %139 : vector<8x1xf32>
    %141 = vector.broadcast %133 : vector<8x1xf32> to vector<8x512xf32>
    %142 = arith.subf %126, %141 : vector<8x512xf32>
    %c0_118 = arith.constant 0 : index
    %c0_119 = arith.constant 0 : index
    %143 = vector.load %arg8[%c0_118, %c0_119] : memref<8x1xf32, #tpu.memory_space<vmem>>, vector<8x1xf32>
    %144 = arith.mulf %140, %143 : vector<8x1xf32>
    %145 = vector.broadcast %144 : vector<8x1xf32> to vector<8x512xf32>
    %146 = arith.mulf %142, %145 : vector<8x512xf32>
    %c0_120 = arith.constant 0 : index
    %c0_121 = arith.constant 0 : index
    %147 = vector.load %arg9[%c0_120, %c0_121] : memref<8x1xf32, #tpu.memory_space<vmem>>, vector<8x1xf32>
    %148 = vector.broadcast %147 : vector<8x1xf32> to vector<8x512xf32>
    %149 = arith.addf %146, %148 : vector<8x512xf32>
    %c0_122 = arith.constant 0 : index
    %c0_123 = arith.constant 0 : index
    %150 = vector.load %arg0[%c0_122, %c0_123] : memref<8x512xf32, #tpu.memory_space<vmem>>, vector<8x512xf32>
    %151 = arith.addf %150, %149 : vector<8x512xf32>
    %cst_124 = arith.constant 0.000000e+00 : f32
    %152 = vector.broadcast %cst_124 : f32 to vector<8x512xf32>
    %153 = arith.maximumf %151, %152 : vector<8x512xf32>
    %c0_125 = arith.constant 0 : index
    %c0_126 = arith.constant 0 : index
    %154 = vector.load %arg10[%c0_125, %c0_126] : memref<8x512xf32, #tpu.memory_space<vmem>>, vector<8x512xf32>
    tpu.vector_store %arg10[%c0_125, %c0_126], %153 {strides = array<i32>} : memref<8x512xf32, #tpu.memory_space<vmem>>, vector<8x512xf32>,
    return
  }
}

</mosaic_0001>

<bundles_post_ra>
// kernel: tpu_custom_call.1
= control target key start
LH: loop header
LB: loop body
LE: loop exit
PB: predicated region body
PF: predicated region fallthrough
CT: control target
= control target key end

     0   :  { %15 = vsyncpa [#allocation5], 0  ;;  %s6719_s0 = inlined_call_operand.vmem [shape: f32[8,512], index: 0, kind: input, shape index: {}]   ;;  %s6720_s1 = inlined_call_operand.hbm [shape: f32[9,512], index: 1, kind: input, shape index: {}]   ;;  %s6721_s2 = inlined_call_operand.vmem [shape: f32[8,72], index: 2, kind: input, shape index: {}]   ;;  %s6722_s3 = inlined_call_operand.vmem [shape: f32[8,1], index: 3, kind: input, shape index: {}]   ;;  %s6723_s4 = inlined_call_operand.vmem [shape: f32[8,1], index: 4, kind: input, shape index: {}]   ;;  %s6724_s5 = inlined_call_operand.vmem [shape: f32[8,1], index: 5, kind: input, shape index: {}]   ;;  %s6725_s6 = inlined_call_operand.vmem [shape: f32[8,72], index: 6, kind: input, shape index: {}]   ;;  %s6726_s7 = inlined_call_operand.vmem [shape: f32[8,1], index: 7, kind: input, shape index: {}]   ;;  %s6727_s8 = inlined_call_operand.vmem [shape: f32[8,1], index: 8, kind: input, shape index: {}]   ;;  %s6728_s9 = inlined_call_operand.vmem [shape: f32[8,1], index: 9, kind: input, shape index: {}]   ;;  %s6729_s10 = inlined_call_operand.hbm [shape: f32[8,512], index: 10, kind: output, shape index: {}]  }
   0x1   :  { %16 = vsyncpa [#allocation6], 0  ;;  %s4641_s13 = smov [#allocation4]   ;;  %s4593_s17 = scalar_lea.hbm %s6720_s1, 1024 }
   0x2   :  { %s24_s14 = sshll.u32 %s4641_s13, 4  ;;  %p4594_p0 = scmp.ne.s32.totalorder %s6720_s1, %s4593_s17  ;;  %s25_s14 = int_to_ptr.vmem [resolvable:$true] %s24_s14 }
   0x3   :  { %p4597_p1 = scmp.lt.u32.totalorder %s4593_s17, %s6720_s1 }
   0x5   :  { %p4599_p2 = pnand %p4597_p1, %p4594_p0 }
   0x7   :  { %4602 = shalt.err (!%p4599_p2)
}
   0x8   :  { %s4603_s22 = scalar_lea.vmem %s25_s14, 1024  ;;  %p4608_p4 = scmp.lt.s32.totalorder %s25_s14, %s25_s14 }
   0x9   :  { %p4604_p3 = scmp.ne.s32.totalorder %s25_s14, %s4603_s22  ;;  %p4609_p5 = scmp.lt.s32.totalorder %s4603_s22, %s4603_s22 }
   0xb   :  { %p4610_p6 = por %p4609_p5, %p4608_p4 }
   0xd   :  { %p4611_p7 = pnand %p4610_p6, %p4604_p3 }
   0xf   :  { %4614 = shalt.err (!%p4611_p7)
}
  0x10   :  { %s4642_s23 = smov 512   ;;  %s4643_s24 = smov 32  }
  0x11   :  { %30 = dma.hbm_to_vmem [thread:$0]  %s6720_s1, 1024, %s25_s14, [#allocation5], %s4642_s23, %s4642_s23, %s4643_s24  }
  0x12   :  { %4637 = dma.done.wait [#allocation5], 1024  }
  0x13   :  { %4638 = vsyncadd [#allocation5], 4294966272  ;;  %v67_v0 = vlaneseq  ;;  %v65_v5 = vld [vmem:[#allocation4] ss:$8 sm:$0xf]  ;;  %s4644_s27 = smov 111  }
  0x14   :  { %v139_v6 = vld [vmem:[#allocation4 + $0x1] ss:$8 sm:$0xf]  ;;  %s4645_s1 = smov 112   ;;  %s4646_s28 = smov 113   ;;  %vm91_vm0 = vcmask 908288  }
  0x15   :  { %v68_v1 = vshrl.u32 %v67_v0, 7  ;;  %v213_v16 = vld [vmem:[#allocation4 + $0x2] ss:$8 sm:$0xf]  ;;  %s4647_s29 = smov 127   ;;  %s4648_s30 = smov 1  }
  0x16   :  { %v287_v19 = vld [vmem:[#allocation4 + $0x3] ss:$8 sm:$0xf]  ;;  %v369_v26 = vld [vmem:[#allocation4 + $0x5] ss:$8 sm:$0xf] }
  0x17   :  { %v4722_v2 = vsub.s32 2, %v68_v1  ;;  %v4724_v3 = vsub.s32 0, %v68_v1  ;;  %v4726_v4 = vsub.s32 1, %v68_v1  ;;  %v4738_v13 = vsub.s32 3, %v68_v1  ;;  %s4649_s11 = smov 15   ;;  %s4650_s12 = smov 16  }
  0x18   :  { %v441_v31 = vld [vmem:[#allocation4 + $0x6] ss:$8 sm:$0xf]  ;;  %v513_v34 = vld [vmem:[#allocation4 + $0x7] ss:$8 sm:$0xf] }
  0x19   :  { %6909 = vst [vmem:[#allocation10_spill] sm:$0xff] %v4722_v2  ;;  %6910 = vst [vmem:[#allocation11_spill] sm:$0xff] %v4724_v3  ;;  %v78_v7 = vrot.slane %v65_v5, %v4722_v2  ;;  %v70_v8 = vrot.slane %v65_v5, %v4724_v3  ;;  %v144_v9 = vrot.slane %v139_v6, %v4724_v3  ;;  %v585_v41 = vld [vmem:[#allocation4 + $0x20] ss:$8 sm:$0xf]  ;;  %s4651_s13 = smov 17  }
  0x1a   :  { %6911 = vst [vmem:[#allocation12_spill] sm:$0xff] %v4726_v4  ;;  %v74_v10 = vrot.slane %v65_v5, %v4726_v4  ;;  %v152_v11 = vrot.slane %v139_v6, %v4722_v2  ;;  %v148_v12 = vrot.slane %v139_v6, %v4726_v4  ;;  %6912 = vst [vmem:[#allocation13_spill] sm:$0xff] %v4738_v13  ;;  %v4811_v54 = vld [vmem:[%s6719_s0 + $0x18] sm:$0xff]  ;;  %vm165_vm1 = vcmask 916480   ;;  %s4654_s17 = smov [#allocation7]  }
  0x1b   :  { %87 = vrot.lane.b32.xlu1 %v78_v7, %s4644_s27  ;;  %83 = vrot.lane.b32.xlu0 %v70_v8, %s4644_s27  ;;  %v156_v14 = vrot.slane %v139_v6, %v4738_v13  ;;  %v82_v15 = vrot.slane %v65_v5, %v4738_v13  ;;  %v222_v17 = vrot.slane %v213_v16, %v4726_v4  ;;  %vm239_vm2 = vcmask 924672   ;;  %s4132_s18 = sshll.u32 %s4654_s17, 4  ;;  %s4133_s18 = int_to_ptr.vmem [resolvable:$true] %s4132_s18 }
  0x1c   :  { %v218_v18 = vrot.slane %v213_v16, %v4724_v3  ;;  %v292_v20 = vrot.slane %v287_v19, %v4724_v3  ;;  %v226_v21 = vrot.slane %v213_v16, %v4722_v2  ;;  %v300_v22 = vrot.slane %v287_v19, %v4722_v2  ;;  %p4620_p9 = scmp.lt.s32.totalorder %s4133_s18, %s4133_s18 }
  0x1d   :  { %v296_v23 = vrot.slane %v287_v19, %v4726_v4  ;;  %v304_v24 = vrot.slane %v287_v19, %v4738_v13  ;;  %v230_v25 = vrot.slane %v213_v16, %v4738_v13  ;;  %v378_v27 = vrot.slane %v369_v26, %v4726_v4 }
  0x1e   :  { %v374_v28 = vrot.slane %v369_v26, %v4724_v3  ;;  %v386_v29 = vrot.slane %v369_v26, %v4738_v13  ;;  %v382_v30 = vrot.slane %v369_v26, %v4722_v2  ;;  %v450_v32 = vrot.slane %v441_v31, %v4726_v4 }
  0x1f   :  { %157 = vrot.lane.b32.xlu1 %v144_v9, %s4645_s1  ;;  %85 = vrot.lane.b32.xlu0 %v74_v10, %s4644_s27  ;;  %v446_v33 = vrot.slane %v441_v31, %v4724_v3  ;;  %v518_v35 = vrot.slane %v513_v34, %v4724_v3  ;;  %v454_v36 = vrot.slane %v441_v31, %v4722_v2  ;;  %vm313_vm3 = vcmask 1039360  }
  0x20   :  { %v526_v37 = vrot.slane %v513_v34, %v4722_v2  ;;  %v522_v38 = vrot.slane %v513_v34, %v4726_v4  ;;  %v458_v39 = vrot.slane %v441_v31, %v4738_v13  ;;  %v530_v40 = vrot.slane %v513_v34, %v4738_v13 }
  0x21   :  { %v594_v42 = vrot.slane %v585_v41, %v4726_v4  ;;  %v590_v43 = vrot.slane %v585_v41, %v4724_v3  ;;  %v598_v44 = vrot.slane %v585_v41, %v4722_v2  ;;  %v602_v45 = vrot.slane %v585_v41, %v4738_v13 }
  0x22   :  { %vm342_vm4 = vcmask 7168   ;;  %vm268_vm5 = vcmask 121856   ;;  %vm194_vm6 = vcmask 130048   ;;  %vm120_vm7 = vcmask 138240  }
  0x23   :  { %161 = vrot.lane.b32.xlu1 %v152_v11, %s4645_s1  ;;  %159 = vrot.lane.b32.xlu0 %v148_v12, %s4645_s1  ;;  %v4855_v12 = vld [vmem:[%s6719_s0] sm:$0xff]  ;;  %vm694_vm8 = vcmask 588800  }
  0x27   :  { %163 = vrot.lane.b32.xlu1 %v156_v14, %s4645_s1  ;;  %89 = vrot.lane.b32.xlu0 %v82_v15, %s4644_s27 }
  0x2b   :  { %233 = vrot.lane.b32.xlu1 %v222_v17, %s4646_s28  ;;  %231 = vrot.lane.b32.xlu0 %v218_v18, %s4646_s28 }
  0x2f   :  { %305 = vrot.lane.b32.xlu1 %v292_v20, %s4647_s29  ;;  %235 = vrot.lane.b32.xlu0 %v226_v21, %s4646_s28 }
  0x33   :  { %309 = vrot.lane.b32.xlu1 %v300_v22, %s4647_s29  ;;  %307 = vrot.lane.b32.xlu0 %v296_v23, %s4647_s29  ;;  %v4870_v22 = vld [vmem:[%s6719_s0 + $0x8] sm:$0xff] }
  0x37   :  { %311 = vrot.lane.b32.xlu1 %v304_v24, %s4647_s29  ;;  %237 = vrot.lane.b32.xlu0 %v230_v25, %s4646_s28 }
  0x3b   :  { %389 = vrot.lane.b32.xlu1 %v378_v27, %s4648_s30  ;;  %387 = vrot.lane.b32.xlu0 %v374_v28, %s4648_s30 }
  0x3f   :  { %393 = vrot.lane.b32.xlu1 %v386_v29, %s4648_s30  ;;  %391 = vrot.lane.b32.xlu0 %v382_v30, %s4648_s30 }
  0x43   :  { %461 = vrot.lane.b32.xlu1 %v450_v32, %s4649_s11  ;;  %459 = vrot.lane.b32.xlu0 %v446_v33, %s4649_s11 }
  0x47   :  { %531 = vrot.lane.b32.xlu1 %v518_v35, %s4650_s12  ;;  %463 = vrot.lane.b32.xlu0 %v454_v36, %s4649_s11 }
  0x4b   :  { %535 = vrot.lane.b32.xlu1 %v526_v37, %s4650_s12  ;;  %533 = vrot.lane.b32.xlu0 %v522_v38, %s4650_s12 }
  0x4f   :  { %465 = vrot.lane.b32.xlu0 %v458_v39, %s4649_s11  ;;  %537 = vrot.lane.b32.xlu1 %v530_v40, %s4650_s12  ;;  %v4909_v40 = vld [vmem:[%s6719_s0 + $0x10] sm:$0xff] }
  0x53   :  { %605 = vrot.lane.b32.xlu1 %v594_v42, %s4651_s13  ;;  %603 = vrot.lane.b32.xlu0 %v590_v43, %s4651_s13 }
  0x57   :  { %607 = vrot.lane.b32.xlu0 %v598_v44, %s4651_s13  ;;  %609 = vrot.lane.b32.xlu1 %v602_v45, %s4651_s13 }
  0x8d   :  { %v4794_v46 = vpop.permute.xlu1 %87  ;;  %v4796_v47 = vpop.permute.xlu0 %83 }
  0x8e   :  { %v100_v48 = vmul.f32 0.0, %v4796_v47 }
  0x90   :  { %110 = vrot.lane.b32.xlu0 %v100_v48, %s4651_s13 }
  0x91   :  { %v4800_v49 = vpop.permute.xlu1 %157  ;;  %v86_v50 = vpop.permute.xlu0 %85 }
  0x92   :  { %v174_v51 = vmul.f32 0.0, %v4800_v49  ;;  %v93_v21 = vsel %vm91_vm0, %v86_v50, %v4794_v46  ;;  %v92_v34 = vsel %vm91_vm0, %v4796_v47, %v86_v50 }
  0x93   :  { %v102_v26 = vmul.f32 %v93_v21, %v4870_v22  ;;  %v101_v37 = vmul.f32 %v92_v34, %v4855_v12 }
  0x94   :  { %184 = vrot.lane.b32.xlu1 %v174_v51, %s4650_s12 }
  0x95   :  { %v4804_v52 = vpop.permute.xlu1 %161  ;;  %v4806_v53 = vpop.permute.xlu0 %159 }
  0x96   :  { %v167_v27 = vsel %vm165_vm1, %v4806_v53, %v4804_v52  ;;  %v166_v38 = vsel %vm165_vm1, %v4800_v49, %v4806_v53 }
  0x97   :  { %v176_v29 = vmul.f32 %v167_v27, %v4870_v22  ;;  %v175_v42 = vmul.f32 %v166_v38, %v4855_v12 }
  0x99   :  { %v4813_v55 = vpop.permute.xlu1 %163  ;;  %v4815_v56 = vpop.permute.xlu0 %89 }
  0x9a   :  { %v104_v57 = vmul.f32 %v4815_v56, %v4811_v54  ;;  %v178_v58 = vmul.f32 %v4813_v55, %v4811_v54  ;;  %v94_v43 = vsel %vm91_vm0, %v4794_v46, %v4815_v56  ;;  %v168_v48 = vsel %vm165_vm1, %v4804_v52, %v4813_v55 }
  0x9b   :  { %v103_v47 = vmul.f32 %v94_v43, %v4909_v40  ;;  %v177_v51 = vmul.f32 %v168_v48, %v4909_v40  ;;  %v6740_v48 = vand.u32 4294901760, %v4811_v54 }
  0x9c   :  { %118 = vrot.lane.b32.xlu1 %v104_v57, %s4651_s13 }
  0x9d   :  { %v4822_v59 = vpop.permute.xlu1 %233  ;;  %v4824_v60 = vpop.permute.xlu0 %231 }
  0x9e   :  { %v248_v61 = vmul.f32 0.0, %v4824_v60  ;;  %v240_v53 = vsel %vm239_vm2, %v4824_v60, %v4822_v59 }
  0x9f   :  { %v249_v57 = vmul.f32 %v240_v53, %v4855_v12  ;;  %v6737_v53 = vand.u32 4294901760, %v4870_v22 }
  0xa0   :  { %258 = vrot.lane.b32.xlu0 %v248_v61, %s4649_s11  ;;  %192 = vrot.lane.b32.xlu1 %v178_v58, %s4650_s12 }
  0xa1   :  { %v4829_v62 = vpop.permute.xlu1 %305  ;;  %v4831_v63 = vpop.permute.xlu0 %235 }
  0xa2   :  { %v322_v0 = vmul.f32 0.0, %v4829_v62  ;;  %v241_v30 = vsel %vm239_vm2, %v4822_v59, %v4831_v63 }
  0xa3   :  { %v250_v33 = vmul.f32 %v241_v30, %v4870_v22 }
  0xa4   :  { %332 = vrot.lane.b32.xlu1 %v322_v0, %s4648_s30 }
  0xa5   :  { %v4835_v1 = vpop.permute.xlu1 %309  ;;  %v4837_v5 = vpop.permute.xlu0 %307 }
  0xa6   :  { %v315_v35 = vsel %vm313_vm3, %v4837_v5, %v4835_v1  ;;  %v314_v58 = vsel %vm313_vm3, %v4829_v62, %v4837_v5 }
  0xa7   :  { %v324_v36 = vmul.f32 %v315_v35, %v4870_v22  ;;  %v323_v0 = vmul.f32 %v314_v58, %v4855_v12 }
  0xa9   :  { %v4839_v6 = vpop.permute.xlu1 %311  ;;  %v4841_v7 = vpop.permute.xlu0 %237 }
  0xaa   :  { %v252_v8 = vmul.f32 %v4841_v7, %v4811_v54  ;;  %v326_v9 = vmul.f32 %v4839_v6, %v4811_v54  ;;  %v242_v62 = vsel %vm239_vm2, %v4831_v63, %v4841_v7 }
  0xac   :  { %266 = vrot.lane.b32.xlu1 %v252_v8, %s4649_s11 }
  0xad   :  { %v4848_v10 = vpop.permute.xlu1 %389  ;;  %v4850_v11 = vpop.permute.xlu0 %387 }
  0xae   :  { %v403_v14 = vmul.f32 %v4850_v11, %v4855_v12 }
  0xb0   :  { %340 = vrot.lane.b32.xlu1 %v326_v9, %s4648_s30  ;;  %413 = vrot.lane.b32.xlu0 %v403_v14, %s4647_s29 }
  0xb1   :  { %v394_v15 = vpop.permute.xlu1 %393  ;;  %v392_v16 = vpop.permute.xlu0 %391 }
  0xb2   :  { %v407_v17 = vmul.f32 0.0, %v394_v15  ;;  %v396_v39 = vsel %vm342_vm4, %v4848_v10, %v392_v16  ;;  %v397_v44 = vsel %vm342_vm4, %v392_v16, %v394_v15  ;;  %v251_v15 = vmul.f32 %v242_v62, %v4909_v40 }
  0xb3   :  { %v405_v41 = vmul.f32 %v396_v39, %v4909_v40  ;;  %v406_v45 = vmul.f32 %v397_v44, %v4811_v54  ;;  %v316_v16 = vsel %vm313_vm3, %v4835_v1, %v4839_v6  ;;  %v5043_v62 = vsub.f32 %v4870_v22, %v6737_v53 }
  0xb4   :  { %421 = vrot.lane.b32.xlu0 %v407_v17, %s4647_s29  ;;  %v325_v7 = vmul.f32 %v316_v16, %v4909_v40  ;;  %v395_v17 = vsel %vm342_vm4, %v4850_v11, %v4848_v10 }
  0xb5   :  { %v4862_v18 = vpop.permute.xlu1 %461  ;;  %v460_v19 = vpop.permute.xlu0 %459  ;;  %v404_v1 = vmul.f32 %v395_v17, %v4870_v22  ;;  %6915 = vst [vmem:[#allocation16_spill] sm:$0xff] %v5043_v62 }
  0xb6   :  { %v475_v20 = vmul.f32 %v460_v19, %v4855_v12  ;;  %v467_v49 = vsel %vm268_vm5, %v460_v19, %v4862_v18 }
  0xb7   :  { %v476_v46 = vmul.f32 %v467_v49, %v4870_v22  ;;  %v651_v49 = vld [vmem:[%s6721_s2] sm:$0xff] }
  0xb8   :  { %485 = vrot.lane.b32.xlu1 %v475_v20, %s4646_s28 }
  0xb9   :  { %v532_v23 = vpop.permute.xlu1 %531  ;;  %v4873_v24 = vpop.permute.xlu0 %463 }
  0xba   :  { %v547_v25 = vmul.f32 %v532_v23, %v4855_v12  ;;  %v468_v6 = vsel %vm268_vm5, %v4862_v18, %v4873_v24 }
  0xbb   :  { %v477_v10 = vmul.f32 %v468_v6, %v4909_v40 }
  0xbc   :  { %114 = vrot.lane.b32.xlu1 %v102_v26, %s4651_s13  ;;  %557 = vrot.lane.b32.xlu0 %v547_v25, %s4645_s1  ;;  %v6733_v26 = vmov 0.0  }
  0xbd   :  { %v4882_v28 = vpop.permute.xlu0 %533  ;;  %v536_v50 = vpop.permute.xlu1 %535  ;;  %780 = vmatprep.mubr.f32.mxu0 %v6733_v26  ;;  %1453 = vmatprep.mubr.f32.mxu1 %v6733_v26 }
  0xbe   :  { %v539_v52 = vsel %vm194_vm6, %v532_v23, %v4882_v28  ;;  %v540_v11 = vsel %vm194_vm6, %v4882_v28, %v536_v50 }
  0xbf   :  { %v548_v56 = vmul.f32 %v539_v52, %v4870_v22  ;;  %v549_v23 = vmul.f32 %v540_v11, %v4909_v40  ;;  %v696_v52 = vsel %vm694_vm8, %v651_v49, 0 }
  0xc0   :  { %188 = vrot.lane.b32.xlu1 %v176_v29, %s4650_s12 }
  0xc1   :  { %v466_v31 = vpop.permute.xlu0 %465  ;;  %v538_v55 = vpop.permute.xlu1 %537 }
  0xc2   :  { %v479_v32 = vmul.f32 0.0, %v466_v31  ;;  %v469_v61 = vsel %vm268_vm5, %v4873_v24, %v466_v31  ;;  %v541_v59 = vsel %vm194_vm6, %v536_v50, %v538_v55  ;;  %v551_v18 = vmul.f32 0.0, %v538_v55 }
  0xc3   :  { %v478_v60 = vmul.f32 %v469_v61, %v4811_v54  ;;  %v550_v5 = vmul.f32 %v541_v59, %v4811_v54  ;;  %v5024_v55 = vsub.f32 %v4811_v54, %v6740_v48 }
  0xc4   :  { %262 = vrot.lane.b32.xlu1 %v250_v33, %s4649_s11  ;;  %493 = vrot.lane.b32.xlu0 %v479_v32, %s4646_s28 }
  0xc5   :  { %v606_v8 = vpop.permute.xlu1 %605  ;;  %v604_v9 = vpop.permute.xlu0 %603  ;;  %6913 = vst [vmem:[#allocation14_spill] sm:$0xff] %v5024_v55  ;;  %v6731_v16 = vand.u32 4294901760, %v5024_v55 }
  0xc6   :  { %v611_v14 = vsel %vm120_vm7, %v604_v9, %v606_v8  ;;  %v619_v19 = vmul.f32 %v604_v9, %v4855_v12 }
  0xc7   :  { %v620_v63 = vmul.f32 %v611_v14, %v4870_v22 }
  0xc8   :  { %336 = vrot.lane.b32.xlu1 %v324_v36, %s4648_s30  ;;  %112 = vrot.lane.b32.xlu0 %v101_v37, %s4651_s13 }
  0xc9   :  { %v610_v20 = vpop.permute.xlu1 %609  ;;  %v608_v25 = vpop.permute.xlu0 %607 }
  0xca   :  { %v623_v21 = vmul.f32 0.0, %v610_v20  ;;  %v612_v24 = vsel %vm120_vm7, %v606_v8, %v608_v25  ;;  %v613_v28 = vsel %vm120_vm7, %v608_v25, %v610_v20  ;;  %v5070_v25 = vsub.f32 %v5024_v55, %v6731_v16 }
  0xcb   :  { %v621_v27 = vmul.f32 %v612_v24, %v4909_v40  ;;  %v622_v29 = vmul.f32 %v613_v28, %v4811_v54 }
  0xcc   :  { %417 = vrot.lane.b32.xlu1 %v405_v41, %s4647_s29  ;;  %186 = vrot.lane.b32.xlu0 %v175_v42, %s4650_s12 }
  0xd0   :  { %419 = vrot.lane.b32.xlu1 %v406_v45, %s4647_s29  ;;  %116 = vrot.lane.b32.xlu0 %v103_v47, %s4651_s13 }
  0xd4   :  { %487 = vrot.lane.b32.xlu1 %v476_v46, %s4646_s28  ;;  %190 = vrot.lane.b32.xlu0 %v177_v51, %s4650_s12  ;;  %v6739_v51 = vand.u32 4294901760, %v4909_v40 }
  0xd6   :  { %v5033_v59 = vsub.f32 %v4909_v40, %v6739_v51 }
  0xd8   :  { %559 = vrot.lane.b32.xlu1 %v548_v56, %s4645_s1  ;;  %260 = vrot.lane.b32.xlu0 %v249_v57, %s4649_s11  ;;  %v6735_v56 = vand.u32 4294901760, %v4855_v12  ;;  %6914 = vst [vmem:[#allocation15_spill] sm:$0xff] %v5033_v59  ;;  %v6730_v20 = vand.u32 4294901760, %v5033_v59 }
  0xdc   :  { %491 = vrot.lane.b32.xlu1 %v478_v60, %s4646_s28  ;;  %334 = vrot.lane.b32.xlu0 %v323_v0, %s4648_s30  ;;  %v5035_v60 = vand.u32 4294901760, %v696_v52 }
  0xde   :  { %v5054_v6 = vsub.f32 %v696_v52, %v5035_v60 }
  0xe0   :  { %264 = vrot.lane.b32.xlu0 %v251_v15, %s4649_s11  ;;  %563 = vrot.lane.b32.xlu1 %v550_v5, %s4645_s1  ;;  %v5048_v15 = vsub.f32 %v4855_v12, %v6735_v56  ;;  %6918 = vst [vmem:[#allocation19_spill] sm:$0xff] %v5054_v6  ;;  %v5084_v49 = vand.u32 4294901760, %v5054_v6 }
  0xe2   :  { %6916 = vst [vmem:[#allocation17_spill] sm:$0xff] %v5048_v15  ;;  %6920 = vst [vmem:[#allocation21_spill] sm:$0xff] %v5084_v49  ;;  %v784_v16 = vsub.f32 %v5054_v6, %v5084_v49 }
  0xe4   :  { %338 = vrot.lane.b32.xlu0 %v325_v7, %s4648_s30  ;;  %631 = vrot.lane.b32.xlu1 %v620_v63, %s4644_s27 }
  0xe8   :  { %415 = vrot.lane.b32.xlu0 %v404_v1, %s4647_s29  ;;  %629 = vrot.lane.b32.xlu1 %v619_v19, %s4644_s27 }
  0xec   :  { %489 = vrot.lane.b32.xlu0 %v477_v10, %s4646_s28  ;;  %637 = vrot.lane.b32.xlu1 %v623_v21, %s4644_s27  ;;  %v6732_v10 = vand.u32 4294901760, %v5043_v62 }
  0xf0   :  { %561 = vrot.lane.b32.xlu0 %v549_v23, %s4645_s1  ;;  %v6736_v23 = vand.u32 4294901760, %v5048_v15 }
  0xf4   :  { %565 = vrot.lane.b32.xlu0 %v551_v18, %s4645_s1 }
  0xf8   :  { %633 = vrot.lane.b32.xlu0 %v621_v27, %s4644_s27 }
  0xfc   :  { %635 = vrot.lane.b32.xlu0 %v622_v29, %s4644_s27 }
 0x102   :  { %v111_v34 = vpop.permute.xlu0 %110 }
 0x106   :  { %v185_v30 = vpop.permute.xlu1 %184 }
 0x10e   :  { %v119_v31 = vpop.permute.xlu1 %118 }
 0x112   :  { %v4992_v32 = vpop.permute.xlu1 %192  ;;  %v4998_v36 = vpop.permute.xlu0 %258 }
 0x116   :  { %v4994_v33 = vpop.permute.xlu1 %332 }
 0x11e   :  { %v4996_v35 = vpop.permute.xlu1 %266 }
 0x122   :  { %v5000_v37 = vpop.permute.xlu1 %340  ;;  %v5002_v38 = vpop.permute.xlu0 %413 }
 0x126   :  { %v422_v41 = vpop.permute.xlu0 %421 }
 0x12a   :  { %v5004_v39 = vpop.permute.xlu1 %485 }
 0x12e   :  { %v115_v42 = vpop.permute.xlu1 %114  ;;  %v5006_v43 = vpop.permute.xlu0 %557 }
 0x132   :  { %v189_v44 = vpop.permute.xlu1 %188 }
 0x136   :  { %v5008_v45 = vpop.permute.xlu1 %262  ;;  %v5010_v47 = vpop.permute.xlu0 %493 }
 0x13a   :  { %v5016_v50 = vpop.permute.xlu1 %336  ;;  %v113_v46 = vpop.permute.xlu0 %112 }
 0x13b   :  { %v122_v57 = vsel %vm120_vm7, %v113_v46, %v115_v42  ;;  %v121_v0 = vsel %vm120_vm7, %v111_v34, %v113_v46  ;;  %v5089_v46 = vsub.f32 %v5033_v59, %v6730_v20 }
 0x13c   :  { %v698_v5 = vand.u32 4294901760, %v122_v57  ;;  %v700_v7 = vand.u32 4294901760, %v121_v0 }
 0x13e   :  { %v5028_v58 = vpop.permute.xlu1 %417  ;;  %v187_v61 = vpop.permute.xlu0 %186  ;;  %v5077_v29 = vsub.f32 %v122_v57, %v698_v5  ;;  %v5100_v57 = vsub.f32 %v5043_v62, %v6732_v10 }
 0x13f   :  { %v195_v8 = vsel %vm194_vm6, %v185_v30, %v187_v61  ;;  %v196_v9 = vsel %vm194_vm6, %v187_v61, %v189_v44  ;;  %v5079_v30 = vsub.f32 %v121_v0, %v700_v7 }
 0x140   :  { %v702_v14 = vand.u32 4294901760, %v196_v9  ;;  %v704_v63 = vand.u32 4294901760, %v195_v8  ;;  %v6744_v20 = vand.u32 4294901760, %v5077_v29 }
 0x142   :  { %v420_v17 = vpop.permute.xlu1 %419  ;;  %v117_v19 = vpop.permute.xlu0 %116  ;;  %v5051_v1 = vpack.c.bf16 %v702_v14, %v698_v5  ;;  %v5075_v28 = vpack.c.bf16 %v704_v63, %v700_v7  ;;  %v5121_v10 = vsub.f32 %v196_v9, %v702_v14 }
 0x143   :  { %v5059_v21 = vsel %vm313_vm3, %v5028_v58, %v420_v17  ;;  %v5063_v11 = vsel %vm313_vm3, %v420_v17, %v422_v41  ;;  %v123_v24 = vsel %vm120_vm7, %v115_v42, %v117_v19  ;;  %v124_v27 = vsel %vm120_vm7, %v117_v19, %v119_v31 }
 0x144   :  { %6917 = vst [vmem:[#allocation18_spill] sm:$0xff] %v5051_v1  ;;  %4142 = vmatprep.subr.bf16.mxu0 %v5051_v1  ;;  %v6738_v18 = vand.u32 4294901760, %v5059_v21  ;;  %6919 = vst [vmem:[#allocation20_spill] sm:$0xff] %v5075_v28  ;;  %v5091_v42 = vsub.f32 %v195_v8, %v704_v63  ;;  %v1391_v61 = vand.u32 4294901760, %v5063_v11  ;;  %v1371_v0 = vand.u32 4294901760, %v124_v27 }
 0x145   :  { %4144 = vmatpush1.bf16.msra.mxu0 %v5075_v28  ;;  %v1373_v5 = vand.u32 4294901760, %v123_v24 }
 0x146   :  { %v5081_v34 = vpop.permute.xlu1 %487  ;;  %v191_v41 = vpop.permute.xlu0 %190  ;;  %v5106_v8 = vsub.f32 %v5059_v21, %v6738_v18  ;;  %v6749_v26 = vand.u32 4294901760, %v5091_v42  ;;  %v5152_v18 = vsub.f32 %v5077_v29, %v6744_v20 }
 0x147   :  { %v197_v31 = vsel %vm194_vm6, %v189_v44, %v191_v41  ;;  %v198_v52 = vsel %vm194_vm6, %v191_v41, %v4992_v32  ;;  %v5111_v32 = vsub.f32 %v5048_v15, %v6736_v23  ;;  %v6741_v44 = vand.u32 4294901760, %v5079_v30 }
 0x148   :  { %v1375_v7 = vand.u32 4294901760, %v198_v52  ;;  %6921 = vst [vmem:[#allocation22_spill] sm:$0xff] %v5106_v8  ;;  %v1377_v63 = vand.u32 4294901760, %v197_v31  ;;  %v5126_v23 = vsub.f32 %v5063_v11, %v1391_v61  ;;  %v5128_v53 = vsub.f32 %v123_v24, %v1373_v5 }
 0x149   :  { %v495_v9 = vsel %vm239_vm2, %v5004_v39, %v5081_v34  ;;  %v5145_v24 = vsub.f32 %v5079_v30, %v6741_v44  ;;  %v5154_v39 = vand.u32 4294901760, %v784_v16 }
 0x14a   :  { %v5114_v17 = vpop.permute.xlu1 %559  ;;  %v261_v19 = vpop.permute.xlu0 %260  ;;  %v5116_v41 = vpack.c.bf16 %v1375_v7, %v1371_v0  ;;  %v5140_v11 = vpack.c.bf16 %v1377_v63, %v1373_v5  ;;  %v5162_v5 = vsub.f32 %v124_v27, %v1371_v0  ;;  %v724_v16 = vand.u32 4294901760, %v495_v9 }
 0x14b   :  { %v567_v14 = vsel %vm165_vm1, %v5006_v43, %v5114_v17  ;;  %v5160_v43 = vsub.f32 %v5091_v42, %v6749_v26  ;;  %v269_v44 = vsel %vm268_vm5, %v4998_v36, %v261_v19  ;;  %v270_v48 = vsel %vm268_vm5, %v261_v19, %v5008_v45 }
 0x14c   :  { %6922 = vst [vmem:[#allocation23_spill] sm:$0xff] %v5116_v41  ;;  %4238 = vmatprep.subr.bf16.mxu1 %v5116_v41  ;;  %6923 = vst [vmem:[#allocation24_spill] sm:$0xff] %v5140_v11  ;;  %v728_v2 = vand.u32 4294901760, %v567_v14  ;;  %v6924_v26 = vand.u32 4294901760, %v5106_v8  ;;  %v5181_v13 = vsub.f32 %v197_v31, %v1377_v63  ;;  %v708_v20 = vand.u32 4294901760, %v269_v44 }
 0x14d   :  { %4240 = vmatpush1.bf16.msra.mxu1 %v5140_v11  ;;  %v706_v4 = vand.u32 4294901760, %v270_v48  ;;  %v6926_v41 = vand.u32 4294901760, %v4811_v54  ;;  %v6929_v31 = vand.u32 4294901760, %v5059_v21  ;;  %v6931_v28 = vand.u32 4294901760, %v5128_v53 }
 0x14e   :  { %v5147_v56 = vpop.permute.xlu1 %491  ;;  %v335_v51 = vpop.permute.xlu0 %334  ;;  %v5175_v27 = vsub.f32 %v5106_v8, %v6924_v26  ;;  %6925 = vst [vmem:[#allocation25_spill] sm:$0xff] %v5181_v13  ;;  %v5205_v1 = vsub.f32 %v495_v9, %v724_v16  ;;  %v5207_v8 = vsub.f32 %v198_v52, %v1375_v7  ;;  %v5221_v9 = vsub.f32 %v269_v44, %v708_v20 }
 0x14f   :  { %v343_v36 = vsel %vm342_vm4, %v4994_v33, %v335_v51  ;;  %v344_v0 = vsel %vm342_vm4, %v335_v51, %v5016_v50  ;;  %v5188_v26 = vsel %vm239_vm2, %v5147_v56, %v5010_v47  ;;  %v5192_v33 = vpack.c.bf16 %v1391_v61, %v6926_v41 }
 0x150   :  { %v710_v3 = vand.u32 4294901760, %v344_v0  ;;  %v712_v49 = vand.u32 4294901760, %v343_v36  ;;  %v6928_v51 = vand.u32 4294901760, %v4909_v40  ;;  %v5203_v6 = vsub.f32 %v5128_v53, %v6931_v28 }
 0x151   :  { %6927 = vst [vmem:[#allocation26_spill] sm:$0xff] %v5192_v33  ;;  %v5209_v47 = vsub.f32 %v567_v14, %v728_v2  ;;  %v6772_v28 = vand.u32 4294901760, %v5181_v13 }
 0x152   :  { %v265_v11 = vpop.permute.xlu0 %264  ;;  %v5183_v19 = vpop.permute.xlu1 %563  ;;  %v5198_v63 = vpack.c.bf16 %v6929_v31, %v6928_v51  ;;  %v5215_v21 = vpack.c.bf16 %v710_v3, %v706_v4  ;;  %v5217_v61 = vpack.c.bf16 %v712_v49, %v708_v20  ;;  %v5224_v14 = vsub.f32 %v343_v36, %v712_v49 }
 0x153   :  { %6932 = vst [vmem:[#allocation28_spill] sm:$0xff] %v5209_v47  ;;  %v271_v54 = vsel %vm268_vm5, %v5008_v45, %v265_v11  ;;  %v272_v40 = vsel %vm268_vm5, %v265_v11, %v4996_v35  ;;  %v6935_v11 = vand.u32 4294901760, %v5121_v10  ;;  %v6939_v36 = vand.u32 4294901760, %v5188_v26 }
 0x154   :  { %6930 = vst [vmem:[#allocation27_spill] sm:$0xff] %v5198_v63  ;;  %6933 = vst [vmem:[#allocation29_spill] sm:$0xff] %v5215_v21  ;;  %4146 = vmatprep.subr.bf16.mxu0 %v5215_v21  ;;  %v1379_v31 = vand.u32 4294901760, %v272_v40  ;;  %v1381_v20 = vand.u32 4294901760, %v271_v54  ;;  %v6940_v62 = vand.u32 4294901760, %v5209_v47 }
 0x155   :  { %6934 = vst [vmem:[#allocation30_spill] sm:$0xff] %v5217_v61  ;;  %v807_v51 = vsub.f32 %v5121_v10, %v6935_v11  ;;  %4148 = vmatpush1.bf16.msra.mxu0 %v5217_v61  ;;  %v5255_v52 = vsub.f32 %v5188_v26, %v6939_v36  ;;  %v6781_v11 = vand.u32 4294901760, %v5224_v14 }
 0x156   :  { %v339_v7 = vpop.permute.xlu0 %338  ;;  %v5235_v49 = vpop.permute.xlu1 %631  ;;  %v5270_v36 = vsub.f32 %v5209_v47, %v6940_v62 }
 0x157   :  { %v345_v35 = vsel %vm342_vm4, %v5016_v50, %v339_v7  ;;  %v346_v45 = vsel %vm342_vm4, %v339_v7, %v5000_v37  ;;  %v5239_v50 = vpack.c.bf16 %v728_v2, %v724_v16  ;;  %v796_v37 = vand.u32 4294901760, %v5152_v18 }
 0x158   :  { %v1383_v44 = vand.u32 4294901760, %v346_v45  ;;  %v1385_v41 = vand.u32 4294901760, %v345_v35  ;;  %v5245_v7 = vsub.f32 %v5181_v13, %v6772_v28  ;;  %v808_v16 = vand.u32 4294901760, %v807_v51 }
 0x159   :  { %6936 = vst [vmem:[#allocation31_spill] sm:$0xff] %v5239_v50  ;;  %v5261_v28 = vsub.f32 %v344_v0, %v710_v3  ;;  %v5272_v13 = vsub.f32 %v270_v48, %v706_v4  ;;  %v814_v3 = vand.u32 4294901760, %v5160_v43  ;;  %v6942_v4 = vand.u32 4294901760, %v4870_v22 }
 0x15a   :  { %v416_v61 = vpop.permute.xlu0 %415  ;;  %v5248_v21 = vpack.c.bf16 %v1383_v44, %v1379_v31  ;;  %v5250_v59 = vpack.c.bf16 %v1385_v41, %v1381_v20  ;;  %v5264_v55 = vsub.f32 %v345_v35, %v1385_v41  ;;  %v5283_v41 = vsub.f32 %v271_v54, %v1381_v20  ;;  %v630_v35 = vpop.permute.xlu1 %629 }
 0x15b   :  { %v423_v2 = vsel %vm313_vm3, %v5002_v38, %v416_v61  ;;  %v424_v18 = vsel %vm313_vm3, %v416_v61, %v5028_v58  ;;  %v6941_v58 = vand.u32 4294901760, %v5221_v9  ;;  %v5281_v61 = vsub.f32 %v272_v40, %v1379_v31 }
 0x15c   :  { %6937 = vst [vmem:[#allocation32_spill] sm:$0xff] %v5248_v21  ;;  %6938 = vst [vmem:[#allocation33_spill] sm:$0xff] %v5250_v59  ;;  %v718_v15 = vand.u32 4294901760, %v424_v18  ;;  %4242 = vmatprep.subr.bf16.mxu1 %v5248_v21  ;;  %v720_v38 = vand.u32 4294901760, %v423_v2  ;;  %v802_v40 = vand.u32 4294901760, %v5145_v24  ;;  %v5299_v54 = vsub.f32 %v5224_v14, %v6781_v11 }
 0x15d   :  { %4244 = vmatpush1.bf16.msra.mxu1 %v5250_v59  ;;  %v5279_v0 = vsub.f32 %v5221_v9, %v6941_v58  ;;  %v5303_v22 = vpack.c.bf16 %v808_v16, %v796_v37  ;;  %v6788_v11 = vand.u32 4294901760, %v5272_v13 }
 0x15e   :  { %4246 = vmatprep.subr.bf16.mxu1 %v5192_v33  ;;  %v490_v62 = vpop.permute.xlu0 %489  ;;  %v5288_v48 = vpack.c.bf16 %v718_v15, %v6942_v4  ;;  %v5291_v43 = vsub.f32 %v423_v2, %v720_v38  ;;  %v639_v2 = vsel %vm91_vm0, %v630_v35, %v5235_v49  ;;  %v5313_v24 = vpack.c.bf16 %v814_v3, %v802_v40 }
 0x15f   :  { %v496_v58 = vsel %vm239_vm2, %v5081_v34, %v490_v62  ;;  %v6945_v34 = vand.u32 4294901760, %v4855_v12  ;;  %v5319_v33 = vsub.f32 %v346_v45, %v1383_v44  ;;  %v5321_v35 = vsub.f32 %v424_v18, %v718_v15 }
 0x160   :  { %6943 = vst [vmem:[#allocation34_spill] sm:$0xff] %v5288_v48  ;;  %6944 = vst [vmem:[#allocation35_spill] sm:$0xff] %v5291_v43  ;;  %4150 = vmatprep.subr.bf16.mxu0 %v5288_v48  ;;  %v6789_v16 = vand.u32 4294901760, %v5291_v43  ;;  %v722_v20 = vand.u32 4294901760, %v496_v58  ;;  %v497_v12 = vsel %vm239_vm2, %v490_v62, %v5147_v56  ;;  %v6947_v3 = vand.u32 4294901760, %v5264_v55 }
 0x161   :  { %v5310_v4 = vpack.c.bf16 %v720_v38, %v6945_v34  ;;  %4248 = vmatpush1.bf16.msra.mxu1 %v5198_v63  ;;  %v5333_v34 = vand.u32 4294901760, %v639_v2  ;;  %v6949_v45 = vand.u32 4294901760, %v5261_v28  ;;  %v819_v44 = vsub.f32 %v5272_v13, %v6788_v11 }
 0x162   :  { %v562_v31 = vpop.permute.xlu0 %561  ;;  %v5331_v40 = vsub.f32 %v5264_v55, %v6947_v3  ;;  %v5348_v62 = vsub.f32 %v5291_v43, %v6789_v16  ;;  %v5350_v3 = vsub.f32 %v496_v58, %v722_v20  ;;  %v1397_v37 = vand.u32 4294901760, %v497_v12 }
 0x163   :  { %6946 = vst [vmem:[#allocation36_spill] sm:$0xff] %v5310_v4  ;;  %4152 = vmatpush1.bf16.msra.mxu0 %v5310_v4  ;;  %v568_v38 = vsel %vm165_vm1, %v5114_v17, %v562_v31  ;;  %6948 = vst [vmem:[#allocation37_spill] sm:$0xff] %v5333_v34  ;;  %v831_v15 = vsub.f32 %v5261_v28, %v6949_v45  ;;  %v569_v56 = vsel %vm165_vm1, %v562_v31, %v5183_v19 }
 0x164   :  { %v726_v51 = vand.u32 4294901760, %v568_v38  ;;  %v6951_v31 = vand.u32 4294901760, %v5283_v41  ;;  %v5365_v58 = vsub.f32 %v639_v2, %v5333_v34  ;;  %v1401_v59 = vand.u32 4294901760, %v569_v56 }
 0x165   :  { %v6953_v11 = vand.u32 4294901760, %v5162_v5  ;;  %v5379_v21 = vsub.f32 %v497_v12, %v1397_v37  ;;  %v6957_v47 = vand.u32 4294901760, %v5321_v35  ;;  %v638_v12 = vpop.permute.xlu1 %637 }
 0x166   :  { %v566_v45 = vpop.permute.xlu0 %565  ;;  %v5352_v63 = vpack.c.bf16 %v726_v51, %v722_v20  ;;  %v5357_v4 = vsub.f32 %v5283_v41, %v6951_v31  ;;  %v832_v20 = vand.u32 4294901760, %v831_v15  ;;  %v5368_v48 = vsub.f32 %v568_v38, %v726_v51 }
 0x167   :  { %v570_v17 = vsel %vm165_vm1, %v5183_v19, %v566_v45  ;;  %v1468_v18 = vsub.f32 %v5162_v5, %v6953_v11  ;;  %v6954_v19 = vand.u32 4294901760, %v5207_v8  ;;  %v820_v51 = vand.u32 4294901760, %v819_v44 }
 0x168   :  { %6950 = vst [vmem:[#allocation38_spill] sm:$0xff] %v5352_v63  ;;  %4154 = vmatprep.subr.bf16.mxu0 %v5352_v63  ;;  %6952 = vst [vmem:[#allocation39_spill] sm:$0xff] %v5368_v48  ;;  %v1399_v31 = vand.u32 4294901760, %v570_v17  ;;  %v6955_v63 = vand.u32 4294901760, %v5188_v26  ;;  %v5392_v2 = vsub.f32 %v569_v56, %v1401_v59  ;;  %v5396_v43 = vpack.c.bf16 %v1401_v59, %v1397_v37 }
 0x169   :  { %4156 = vmatpush1.bf16.msra.mxu0 %v5239_v50  ;;  %v1480_v45 = vsub.f32 %v5207_v8, %v6954_v19  ;;  %v855_v19 = vsub.f32 %v5321_v35, %v6957_v47  ;;  %v4161_v44 = vpack.c.bf16 %v832_v20, %v820_v51  ;;  %v826_v56 = vand.u32 4294901760, %v5279_v0 }
 0x16a   :  { %v634_v15 = vpop.permute.xlu0 %633  ;;  %v5381_v38 = vsub.f32 %v570_v17, %v1399_v31  ;;  %v5387_v11 = vpack.c.bf16 %v1399_v31, %v6955_v63  ;;  %6959 = vst [vmem:[#allocation42_spill] sm:$0xff] %v5396_v43  ;;  %v6960_v63 = vand.u32 4294901760, %v5319_v33  ;;  %v838_v59 = vand.u32 4294901760, %v5299_v54 }
 0x16b   :  { %v640_v50 = vsel %vm91_vm0, %v5235_v49, %v634_v15  ;;  %v1469_v49 = vand.u32 4294901760, %v1468_v18  ;;  %v1481_v26 = vand.u32 4294901760, %v1480_v45  ;;  %v1487_v37 = vand.u32 4294901760, %v5245_v7 }
 0x16c   :  { %6956 = vst [vmem:[#allocation40_spill] sm:$0xff] %v5387_v11  ;;  %v5394_v16 = vand.u32 4294901760, %v640_v50  ;;  %4250 = vmatprep.subr.bf16.mxu1 %v5387_v11  ;;  %v1504_v31 = vsub.f32 %v5319_v33, %v6960_v63  ;;  %v6961_v20 = vand.u32 4294901760, %v5281_v61  ;;  %v856_v17 = vand.u32 4294901760, %v855_v19 }
 0x16d   :  { %4252 = vmatpush1.bf16.msra.mxu1 %v5396_v43 }
 0x16e   :  { %6958 = vst [vmem:[#allocation41_spill] sm:$0xff] %v5394_v16  ;;  %731 = vmatprep.subr.mxu0 %v5394_v16  ;;  %v636_v47 = vpop.permute.xlu0 %635  ;;  %v1492_v18 = vsub.f32 %v5281_v61, %v6961_v20  ;;  %v5416_v43 = vsub.f32 %v640_v50, %v5394_v16  ;;  %v1505_v7 = vand.u32 4294901760, %v1504_v31  ;;  %v6963_v50 = vand.u32 4294901760, %v5368_v48 }
 0x16f   :  { %v641_v51 = vsel %vm91_vm0, %v634_v15, %v636_v47  ;;  %v642_v63 = vsel %vm91_vm0, %v636_v47, %v638_v12  ;;  %733 = vmatpush1.msra.mxu0 %v5333_v34  ;;  %v1475_v15 = vand.u32 4294901760, %v5203_v6  ;;  %v6962_v12 = vand.u32 4294901760, %v5350_v3 }
 0x170   :  { %v5418_v0 = vand.u32 4294901760, %v642_v63  ;;  %v5420_v54 = vand.u32 4294901760, %v641_v51  ;;  %4158 = vmatprep.subr.bf16.mxu0 %v5303_v22  ;;  %786 = vmatmul.mubr.f32.vlgmr.msra.gmra.mrb[0].mxu0 %v5154_v39  ;;  %v879_v47 = vsub.f32 %v5368_v48, %v6963_v50  ;;  %v6964_v20 = vand.u32 4294901760, %v5126_v23 }
 0x171   :  { %4160 = vmatpush1.bf16.msra.mxu0 %v5313_v24  ;;  %v867_v19 = vsub.f32 %v5350_v3, %v6962_v12  ;;  %v6817_v22 = vand.u32 4294901760, %v5392_v2  ;;  %v4253_v24 = vpack.c.bf16 %v1481_v26, %v1469_v49  ;;  %v4163_v31 = vpack.c.bf16 %v838_v59, %v826_v56 }
 0x172   :  { %v1528_v45 = vsub.f32 %v5126_v23, %v6964_v20  ;;  %4162 = vmatprep.subr.bf16.mxu0 %v4161_v44  ;;  %1404 = vmatprep.subr.mxu1 %v5418_v0  ;;  %v1493_v6 = vand.u32 4294901760, %v1492_v18  ;;  %v5438_v34 = vsub.f32 %v642_v63, %v5418_v0  ;;  %v4255_v12 = vpack.c.bf16 %v1487_v37, %v1475_v15 }
 0x173   :  { %1406 = vmatpush1.msra.mxu1 %v5420_v54  ;;  %v6965_v50 = vand.u32 4294901760, %v5100_v57  ;;  %v880_v11 = vand.u32 4294901760, %v879_v47  ;;  %v6966_v48 = vmov 0.0   ;;  %v6819_v49 = vand.u32 4294901760, %v5416_v43 }
 0x174   :  { %946 = vmatprep.mubr.f32.mxu0 %v6966_v48  ;;  %4254 = vmatprep.subr.bf16.mxu1 %v4253_v24  ;;  %v4257_v44 = vpack.c.bf16 %v1505_v7, %v1493_v6  ;;  %v1529_v20 = vand.u32 4294901760, %v1528_v45  ;;  %v6967_v26 = vand.u32 4294901760, %v5381_v38  ;;  %v6968_v59 = vand.u32 4294901760, %v5205_v1 }
 0x175   :  { %v4165_v16 = vpack.c.bf16 %v856_v17, %v6965_v50  ;;  %1459 = vmatmul.mubr.f32.vlgmr.msra.gmra.mrb[0].mxu1 %v5154_v39  ;;  %v1499_v57 = vand.u32 4294901760, %v5357_v4  ;;  %v6818_v17 = vand.u32 4294901760, %v5379_v21  ;;  %4164 = vmatpush1.bf16.msra.mxu0 %v4163_v31  ;;  %v868_v18 = vand.u32 4294901760, %v867_v19 }
 0x176   :  { %v1552_v56 = vsub.f32 %v5381_v38, %v6967_v26  ;;  %v873_v37 = vsub.f32 %v5205_v1, %v6968_v59  ;;  %4256 = vmatpush1.bf16.msra.mxu1 %v4255_v12  ;;  %v886_v39 = vand.u32 4294901760, %v5270_v36  ;;  %v6816_v45 = vand.u32 4294901760, %v5365_v58  ;;  %1619 = vmatprep.mubr.f32.mxu1 %v6966_v48 }
 0x177   :  { %v1558_v63 = vsub.f32 %v5392_v2, %v6817_v22  ;;  %4166 = vmatprep.subr.bf16.mxu0 %v4165_v16  ;;  %4258 = vmatprep.subr.bf16.mxu1 %v4257_v44  ;;  %v6969_v7 = vand.u32 4294901760, %v5255_v52  ;;  %v5463_v4 = vsub.f32 %v641_v51, %v5420_v54  ;;  %v6970_v47 = vand.u32 4294901760, %v5111_v32 }
 0x178   :  { %v6971_v19 = vand.u32 4294901760, %v5348_v62  ;;  %v6972_v24 = vand.u32 4294901760, %v5331_v40  ;;  %v4169_v6 = vpack.c.bf16 %v880_v11, %v868_v18  ;;  %v6973_v16 = vand.u32 4294901760, %v5070_v25  ;;  %v688_v40 = vld [vmem:[%s6722_s3] sm:$0xff] }
 0x179   :  { %v1540_v15 = vsub.f32 %v5255_v52, %v6969_v7  ;;  %v891_v50 = vsub.f32 %v5416_v43, %v6819_v49  ;;  %v1553_v51 = vand.u32 4294901760, %v1552_v56  ;;  %v6815_v44 = vand.u32 4294901760, %v5438_v34 }
 0x17a   :  { %v4167_v36 = vpack.c.bf16 %v6971_v19, %v6970_v47  ;;  %v4259_v31 = vpack.c.bf16 %v6972_v24, %v1499_v57  ;;  %v4261_v12 = vpack.c.bf16 %v1529_v20, %v6973_v16  ;;  %v874_v32 = vand.u32 4294901760, %v873_v37 }
 0x17b   :  { %v1546_v62 = vsub.f32 %v5379_v21, %v6818_v17  ;;  %v897_v25 = vsub.f32 %v5365_v58, %v6816_v45  ;;  %v1541_v11 = vand.u32 4294901760, %v1540_v15  ;;  %v1559_v20 = vand.u32 4294901760, %v1558_v63  ;;  %v7005_v45 = vld [vmem:[#allocation37_spill] sm:$0xff] }
 0x17c   :  { %4168 = vmatpush1.bf16.msra.mxu0 %v4167_v36  ;;  %4260 = vmatpush1.bf16.msra.mxu1 %v4259_v31  ;;  %v6814_v26 = vand.u32 4294901760, %v5463_v4  ;;  %v4171_v56 = vpack.c.bf16 %v886_v39, %v874_v32  ;;  %v6974_v59 = vand.u32 4294901760, %v5089_v46  ;;  %v6975_v37 = vand.u32 4294901760, %v5175_v27 }
 0x17d   :  { %4170 = vmatprep.subr.bf16.mxu0 %v4169_v6  ;;  %4262 = vmatprep.subr.bf16.mxu1 %v4261_v12  ;;  %v4653_v18 = vmov 0   ;;  %v892_v7 = vand.u32 4294901760, %v891_v50  ;;  %v4265_v47 = vpack.c.bf16 %v1553_v51, %v1541_v11  ;;  %v1564_v19 = vsub.f32 %v5438_v34, %v6815_v44  ;;  %v6976_v12 = vld [vmem:[#allocation25_spill] sm:$0xff] }
 0x17e   :  { %v4263_v57 = vpack.c.bf16 %v6975_v37, %v6974_v59  ;;  %4587 = vset.pattern.permute.xlu0 %v4653_v18  ;;  %v1547_v36 = vand.u32 4294901760, %v1546_v62  ;;  %v1570_v46 = vsub.f32 %v5463_v4, %v6814_v26  ;;  %v898_v27 = vand.u32 4294901760, %v897_v25  ;;  %4588 = vset.pattern.permute.xlu1 %v4653_v18  ;;  %v6977_v62 = vld [vmem:[#allocation16_spill] sm:$0xff]  ;;  %v6978_v11 = vld [vmem:[#allocation17_spill] sm:$0xff]  ;;  %v6980_v59 = vld [vmem:[#allocation14_spill] sm:$0xff] }
 0x17f   :  { %691 = vperm.xlu0 %4587, %v688_v40   ;;  %v4173_v63 = vpack.c.bf16 %v5121_v10, %v5077_v29  ;;  %v1565_v15 = vand.u32 4294901760, %v1564_v19  ;;  %v4175_v24 = vpack.c.bf16 %v5091_v42, %v5079_v30  ;;  %v4177_v31 = vpack.c.bf16 %v5261_v28, %v5272_v13 }
 0x180   :  { %4172 = vmatpush1.bf16.msra.mxu0 %v4171_v56  ;;  %4264 = vmatpush1.bf16.msra.mxu1 %v4263_v57  ;;  %v4267_v39 = vpack.c.bf16 %v1559_v20, %v1547_v36  ;;  %v1571_v6 = vand.u32 4294901760, %v1570_v46  ;;  %v4269_v16 = vpack.c.bf16 %v5207_v8, %v5162_v5  ;;  %v4271_v50 = vpack.c.bf16 %v6976_v12, %v5128_v53  ;;  %v6979_v20 = vld [vmem:[#allocation35_spill] sm:$0xff]  ;;  %v6984_v36 = vld [vmem:[#allocation28_spill] sm:$0xff] }
 0x181   :  { %893 = vmatprep.subr.mxu0 %v892_v7  ;;  %4266 = vmatprep.subr.bf16.mxu1 %v4265_v47  ;;  %v4179_v51 = vpack.c.bf16 %v5224_v14, %v5221_v9  ;;  %v4273_v32 = vpack.c.bf16 %v5319_v33, %v5281_v61  ;;  %v4181_v40 = vpack.c.bf16 %v5321_v35, %v6977_v62  ;;  %v6981_v57 = vld [vmem:[#allocation39_spill] sm:$0xff]  ;;  %v6983_v47 = vld [vmem:[#allocation22_spill] sm:$0xff]  ;;  %v7004_v26 = vand.u32 4294901760, %v5121_v10 }
 0x182   :  { %v4275_v25 = vpack.c.bf16 %v5264_v55, %v5283_v41  ;;  %v4183_v56 = vpack.c.bf16 %v6979_v20, %v6978_v11  ;;  %v4277_v37 = vpack.c.bf16 %v5126_v23, %v6980_v59  ;;  %v4185_v18 = vpack.c.bf16 %v6981_v57, %v5350_v3  ;;  %v6982_v7 = vld [vmem:[#allocation15_spill] sm:$0xff] }
 0x183   :  { %v4279_v19 = vpack.c.bf16 %v6983_v47, %v6982_v7  ;;  %v4187_v46 = vpack.c.bf16 %v6984_v36, %v5205_v1  ;;  %v7006_v22 = vand.u32 4294901760, %v5079_v30  ;;  %v7007_v17 = vand.u32 4294901760, %v5091_v42 }
 0x184   :  { %899 = vmatpush1.msra.mxu0 %v898_v27  ;;  %4268 = vmatpush1.bf16.msra.mxu1 %v4267_v39  ;;  %v4281_v27 = vpack.c.bf16 %v5381_v38, %v5255_v52  ;;  %v4283_v39 = vpack.c.bf16 %v5392_v2, %v5379_v21  ;;  %v7011_v10 = vand.u32 4294901760, %v5162_v5  ;;  %v7013_v30 = vand.u32 4294901760, %v5128_v53 }
 0x185   :  { %4174 = vmatprep.subr.bf16.mxu0 %v4173_v63  ;;  %1566 = vmatprep.subr.mxu1 %v1565_v15  ;;  %v6985_v63 = vld [vmem:[#allocation18_spill] sm:$0xff]  ;;  %v6986_v15 = vld [vmem:[#allocation19_spill] sm:$0xff]  ;;  %v4207_v49 = vpack.c.bf16 %v7007_v17, %v7006_v22  ;;  %v7014_v42 = vand.u32 4294901760, %v6976_v12  ;;  %v7018_v5 = vand.u32 4294901760, %v5319_v33  ;;  %v7020_v53 = vand.u32 4294901760, %v5321_v35 }
 0x186   :  { %948 = vmatmul.mubr.f32.vlgmr.msra.gmra.mrb[0].mxu0 %v5035_v60  ;;  %v7024_v33 = vand.u32 4294901760, %v6979_v20  ;;  %v7026_v35 = vand.u32 4294901760, %v5126_v23  ;;  %v7031_v20 = vand.u32 4294901760, %v5205_v1  ;;  %v7038_v1 = vand.u32 4294901760, %v5365_v58 }
 0x187   :  { %4176 = vmatpush1.bf16.msra.mxu0 %v4175_v24  ;;  %1054 = vmatprep.mubr.f32.mxu0 %v6966_v48  ;;  %v6987_v24 = vld [vmem:[#allocation20_spill] sm:$0xff]  ;;  %v4303_v22 = vpack.c.bf16 %v7014_v42, %v7013_v30 }
 0x188   :  { %4178 = vmatprep.subr.bf16.mxu0 %v4177_v31  ;;  %1572 = vmatpush1.msra.mxu1 %v1571_v6  ;;  %v6988_v31 = vld [vmem:[#allocation29_spill] sm:$0xff]  ;;  %v6989_v6 = vld [vmem:[#allocation23_spill] sm:$0xff] }
 0x189   :  { %4270 = vmatprep.subr.bf16.mxu1 %v4269_v16  ;;  %1621 = vmatmul.mubr.f32.vlgmr.msra.gmra.mrb[0].mxu1 %v5035_v60  ;;  %v6990_v16 = vld [vmem:[#allocation24_spill] sm:$0xff] }
 0x18a   :  { %4272 = vmatpush1.bf16.msra.mxu1 %v4271_v50  ;;  %1727 = vmatprep.mubr.f32.mxu1 %v6966_v48  ;;  %v6991_v50 = vld [vmem:[#allocation30_spill] sm:$0xff] }
 0x18b   :  { %4180 = vmatpush1.bf16.msra.mxu0 %v4179_v51  ;;  %4274 = vmatprep.subr.bf16.mxu1 %v4273_v32  ;;  %v6992_v51 = vld [vmem:[#allocation32_spill] sm:$0xff]  ;;  %v6993_v32 = vld [vmem:[#allocation34_spill] sm:$0xff] }
 0x18c   :  { %4182 = vmatprep.subr.bf16.mxu0 %v4181_v40  ;;  %v6994_v40 = vld [vmem:[#allocation33_spill] sm:$0xff] }
 0x18e   :  { %4276 = vmatpush1.bf16.msra.mxu1 %v4275_v25  ;;  %v6995_v25 = vld [vmem:[#allocation36_spill] sm:$0xff] }
 0x18f   :  { %4184 = vmatpush1.bf16.msra.mxu0 %v4183_v56  ;;  %4278 = vmatprep.subr.bf16.mxu1 %v4277_v37  ;;  %v6996_v56 = vld [vmem:[#allocation26_spill] sm:$0xff] }
 0x190   :  { %4186 = vmatprep.subr.bf16.mxu0 %v4185_v18  ;;  %v6997_v37 = vld [vmem:[#allocation38_spill] sm:$0xff]  ;;  %v6998_v18 = vld [vmem:[#allocation27_spill] sm:$0xff] }
 0x192   :  { %4280 = vmatpush1.bf16.msra.mxu1 %v4279_v19  ;;  %v6999_v19 = vld [vmem:[#allocation31_spill] sm:$0xff] }
 0x193   :  { %4188 = vmatpush1.bf16.msra.mxu0 %v4187_v46  ;;  %4282 = vmatprep.subr.bf16.mxu1 %v4281_v27  ;;  %v7000_v46 = vld [vmem:[#allocation40_spill] sm:$0xff]  ;;  %v7001_v27 = vld [vmem:[#allocation41_spill] sm:$0xff] }
 0x194   :  { %1004 = vmatprep.subr.mxu0 %v5416_v43 }
 0x196   :  { %4284 = vmatpush1.bf16.msra.mxu1 %v4283_v39  ;;  %v7002_v39 = vld [vmem:[#allocation42_spill] sm:$0xff] }
 0x197   :  { %1007 = vmatpush1.msra.mxu0 %v5365_v58  ;;  %1677 = vmatprep.subr.mxu1 %v5438_v34  ;;  %v7043_v58 = vld [vmem:[#allocation42_spill] sm:$0xff] }
 0x198   :  { %4190 = vmatprep.subr.bf16.mxu0 %v6985_v63  ;;  %1057 = vmatmul.mubr.f32.vlgmr.msra.gmra.mrb[0].mxu0 %v6986_v15 }
 0x199   :  { %4192 = vmatpush1.bf16.msra.mxu0 %v6987_v24  ;;  %1145 = vmatprep.mubr.f32.mxu0 %v6966_v48 }
 0x19a   :  { %4194 = vmatprep.subr.bf16.mxu0 %v6988_v31  ;;  %1680 = vmatpush1.msra.mxu1 %v5463_v4 }
 0x19b   :  { %4286 = vmatprep.subr.bf16.mxu1 %v6989_v6  ;;  %1730 = vmatmul.mubr.f32.vlgmr.msra.gmra.mrb[0].mxu1 %v6986_v15  ;;  %v7003_v15 = vand.u32 4294901760, %v5077_v29 }
 0x19c   :  { %4288 = vmatpush1.bf16.msra.mxu1 %v6990_v16  ;;  %1818 = vmatprep.mubr.f32.mxu1 %v6966_v48 }
 0x19d   :  { %4196 = vmatpush1.bf16.msra.mxu0 %v6991_v50  ;;  %4290 = vmatprep.subr.bf16.mxu1 %v6992_v51  ;;  %v4205_v44 = vpack.c.bf16 %v7004_v26, %v7003_v15  ;;  %v7012_v26 = vand.u32 4294901760, %v5207_v8  ;;  %v7017_v8 = vand.u32 4294901760, %v5281_v61  ;;  %v7023_v61 = vand.u32 4294901760, %v6978_v11 }
 0x19e   :  { %4198 = vmatprep.subr.bf16.mxu0 %v6993_v32 }
 0x19f   :  { %v4301_v15 = vpack.c.bf16 %v7012_v26, %v7011_v10  ;;  %v4305_v17 = vpack.c.bf16 %v7018_v5, %v7017_v8  ;;  %v7028_v10 = vand.u32 4294901760, %v6981_v57  ;;  %v7035_v57 = vand.u32 4294901760, %v5416_v43  ;;  %v7041_v43 = vld [vmem:[#allocation40_spill] sm:$0xff]  ;;  %v7046_v5 = vld [vmem:[#allocation10_spill] sm:$0xff] }
 0x1a0   :  { %4292 = vmatpush1.bf16.msra.mxu1 %v6994_v40 }
 0x1a1   :  { %4200 = vmatpush1.bf16.msra.mxu0 %v6995_v25  ;;  %4294 = vmatprep.subr.bf16.mxu1 %v6996_v56 }
 0x1a2   :  { %4202 = vmatprep.subr.bf16.mxu0 %v6997_v37 }
 0x1a4   :  { %4296 = vmatpush1.bf16.msra.mxu1 %v6998_v18 }
 0x1a5   :  { %4204 = vmatpush1.bf16.msra.mxu0 %v6999_v19  ;;  %4298 = vmatprep.subr.bf16.mxu1 %v7000_v46  ;;  %v7008_v46 = vld [vmem:[#allocation21_spill] sm:$0xff] }
 0x1a6   :  { %1096 = vmatprep.subr.mxu0 %v7001_v27  ;;  %v7009_v27 = vand.u32 4294901760, %v5272_v13  ;;  %v7015_v13 = vand.u32 4294901760, %v5221_v9  ;;  %v7021_v9 = vand.u32 4294901760, %v5283_v41  ;;  %v7030_v41 = vand.u32 4294901760, %v6983_v47 }
 0x1a7   :  { %v7037_v47 = vand.u32 4294901760, %v5392_v2 }
 0x1a8   :  { %4300 = vmatpush1.bf16.msra.mxu1 %v7002_v39  ;;  %v7010_v39 = vand.u32 4294901760, %v5261_v28  ;;  %v7016_v28 = vand.u32 4294901760, %v5224_v14  ;;  %v7022_v14 = vand.u32 4294901760, %v5264_v55  ;;  %v7029_v55 = vand.u32 4294901760, %v6982_v7 }
 0x1a9   :  { %1098 = vmatpush1.msra.mxu0 %v7005_v45  ;;  %1769 = vmatprep.subr.mxu1 %v5418_v0  ;;  %v7036_v7 = vand.u32 4294901760, %v5379_v21  ;;  %v7040_v21 = vand.u32 4294901760, %v5463_v4 }
 0x1aa   :  { %4206 = vmatprep.subr.bf16.mxu0 %v4205_v44  ;;  %1149 = vmatmul.mubr.f32.vlgmr.msra.gmra.mrb[0].mxu0 %v7008_v46  ;;  %v4209_v29 = vpack.c.bf16 %v7010_v39, %v7009_v27  ;;  %v7019_v44 = vand.u32 4294901760, %v6977_v62  ;;  %v4215_v27 = vpack.c.bf16 %v7024_v33, %v7023_v61  ;;  %v7025_v62 = vand.u32 4294901760, %v6980_v59  ;;  %v2315_v33 = vld [vmem:[#allocation4 + $0x3] ss:$8 sm:$0xf] }
 0x1ab   :  { %4208 = vmatpush1.bf16.msra.mxu0 %v4207_v49  ;;  %1273 = vmatprep.mubr.f32.mxu0 %v6966_v48  ;;  %v4211_v49 = vpack.c.bf16 %v7016_v28, %v7015_v13  ;;  %v4311_v11 = vpack.c.bf16 %v7030_v41, %v7029_v55  ;;  %v7032_v59 = vand.u32 4294901760, %v6984_v36  ;;  %v4315_v42 = vpack.c.bf16 %v7037_v47, %v7036_v7  ;;  %v2173_v28 = vld [vmem:[#allocation4 + $0x1] ss:$8 sm:$0xf] }
 0x1ac   :  { %4210 = vmatprep.subr.bf16.mxu0 %v4209_v29  ;;  %1771 = vmatpush1.msra.mxu1 %v5420_v54  ;;  %v4213_v12 = vpack.c.bf16 %v7020_v53, %v7019_v44  ;;  %v4309_v39 = vpack.c.bf16 %v7026_v35, %v7025_v62  ;;  %v7027_v29 = vand.u32 4294901760, %v5350_v3  ;;  %v7034_v3 = vand.u32 4294901760, %v5381_v38  ;;  %v2394_v55 = vld [vmem:[#allocation4 + $0x5] ss:$8 sm:$0xf] }
 0x1ad   :  { %4302 = vmatprep.subr.bf16.mxu1 %v4301_v15  ;;  %1822 = vmatmul.mubr.f32.vlgmr.msra.gmra.mrb[0].mxu1 %v7008_v46  ;;  %v4307_v46 = vpack.c.bf16 %v7022_v14, %v7021_v9  ;;  %v4219_v23 = vpack.c.bf16 %v7032_v59, %v7031_v20  ;;  %v7033_v15 = vand.u32 4294901760, %v5255_v52  ;;  %v7039_v52 = vand.u32 4294901760, %v5438_v34  ;;  %v7042_v34 = vld [vmem:[#allocation41_spill] sm:$0xff] }
 0x1ae   :  { %4304 = vmatpush1.bf16.msra.mxu1 %v4303_v22  ;;  %1946 = vmatprep.mubr.f32.mxu1 %v6966_v48  ;;  %v4217_v26 = vpack.c.bf16 %v7028_v10, %v7027_v29  ;;  %v7045_v22 = vld [vmem:[#allocation12_spill] sm:$0xff]  ;;  %v2186_v44 = vrot.slane %v2173_v28, %v7046_v5  ;;  %v2407_v59 = vrot.slane %v2394_v55, %v7046_v5 }
 0x1af   :  { %4212 = vmatpush1.bf16.msra.mxu0 %v4211_v49  ;;  %4306 = vmatprep.subr.bf16.mxu1 %v4305_v17  ;;  %v4313_v30 = vpack.c.bf16 %v7034_v3, %v7033_v15  ;;  %v2079_v49 = vld [vmem:[%s6724_s5] sm:$0xff]  ;;  %v2182_v53 = vrot.slane %v2173_v28, %v7045_v22  ;;  %v2324_v29 = vrot.slane %v2315_v33, %v7045_v22 }
 0x1b0   :  { %4214 = vmatprep.subr.bf16.mxu0 %v4213_v12  ;;  %v7047_v12 = vld [vmem:[#allocation13_spill] sm:$0xff]  ;;  %v2403_v41 = vrot.slane %v2394_v55, %v7045_v22 }
 0x1b1   :  { %v2190_v9 = vrot.slane %v2173_v28, %v7047_v12  ;;  %v2244_v14 = vld [vmem:[#allocation4 + $0x2] ss:$8 sm:$0xf]  ;;  %v2332_v10 = vrot.slane %v2315_v33, %v7047_v12  ;;  %v2411_v20 = vrot.slane %v2394_v55, %v7047_v12  ;;  %v2536_v3 = vld [vmem:[#allocation4 + $0x7] ss:$8 sm:$0xf] }
 0x1b2   :  { %4308 = vmatpush1.bf16.msra.mxu1 %v4307_v46  ;;  %v2253_v61 = vrot.slane %v2244_v14, %v7045_v22  ;;  %v2257_v35 = vrot.slane %v2244_v14, %v7046_v5  ;;  %v2545_v47 = vrot.slane %v2536_v3, %v7045_v22 }
 0x1b3   :  { %4216 = vmatpush1.bf16.msra.mxu0 %v4215_v27  ;;  %4310 = vmatprep.subr.bf16.mxu1 %v4309_v39  ;;  %v2328_v39 = vrot.slane %v2315_v33, %v7046_v5 }
 0x1b4   :  { %4218 = vmatprep.subr.bf16.mxu0 %v4217_v26  ;;  %v2261_v26 = vrot.slane %v2244_v14, %v7047_v12 }
 0x1b6   :  { %4312 = vmatpush1.bf16.msra.mxu1 %v4311_v11 }
 0x1b7   :  { %4220 = vmatpush1.bf16.msra.mxu0 %v4219_v23  ;;  %4314 = vmatprep.subr.bf16.mxu1 %v4313_v30  ;;  %v2465_v23 = vld [vmem:[#allocation4 + $0x6] ss:$8 sm:$0xf] }
 0x1b8   :  { %1222 = vmatprep.subr.mxu0 %v7035_v57  ;;  %v2474_v15 = vrot.slane %v2465_v23, %v7045_v22  ;;  %v2478_v7 = vrot.slane %v2465_v23, %v7046_v5 }
 0x1ba   :  { %4316 = vmatpush1.bf16.msra.mxu1 %v4315_v42  ;;  %v2482_v42 = vrot.slane %v2465_v23, %v7047_v12 }
 0x1bb   :  { %1226 = vmatpush1.msra.mxu0 %v7038_v1  ;;  %1895 = vmatprep.subr.mxu1 %v7039_v52  ;;  %v2607_v1 = vld [vmem:[#allocation4 + $0x20] ss:$8 sm:$0xf] }
 0x1bc   :  { %4222 = vmatprep.subr.bf16.mxu0 %v6985_v63  ;;  %1275 = vmatmul.mubr.f32.vlgmr.msra.gmra.mrb[0].mxu0 %v5035_v60 }
 0x1bd   :  { %4224 = vmatpush1.bf16.msra.mxu0 %v6987_v24  ;;  %1363 = vmatprep.mubr.f32.mxu0 %v6966_v48 }
 0x1be   :  { %4226 = vmatprep.subr.bf16.mxu0 %v6988_v31  ;;  %1899 = vmatpush1.msra.mxu1 %v7040_v21  ;;  %v2620_v21 = vrot.slane %v2607_v1, %v7046_v5 }
 0x1bf   :  { %4318 = vmatprep.subr.bf16.mxu1 %v6989_v6  ;;  %1948 = vmatmul.mubr.f32.vlgmr.msra.gmra.mrb[0].mxu1 %v5035_v60 }
 0x1c0   :  { %4320 = vmatpush1.bf16.msra.mxu1 %v6990_v16  ;;  %2036 = vmatprep.mubr.f32.mxu1 %v6966_v48 }
 0x1c1   :  { %4228 = vmatpush1.bf16.msra.mxu0 %v6991_v50  ;;  %4322 = vmatprep.subr.bf16.mxu1 %v6992_v51 }
 0x1c2   :  { %4230 = vmatprep.subr.bf16.mxu0 %v6993_v32 }
 0x1c4   :  { %4324 = vmatpush1.bf16.msra.mxu1 %v6994_v40 }
 0x1c5   :  { %4232 = vmatpush1.bf16.msra.mxu0 %v6995_v25  ;;  %4326 = vmatprep.subr.bf16.mxu1 %v6996_v56 }
 0x1c6   :  { %4234 = vmatprep.subr.bf16.mxu0 %v6997_v37  ;;  %v2102_v37 = vld [vmem:[#allocation4] ss:$8 sm:$0xf] }
 0x1c7   :  { %v2111_v13 = vrot.slane %v2102_v37, %v7045_v22  ;;  %v2115_v17 = vrot.slane %v2102_v37, %v7046_v5  ;;  %v2119_v46 = vrot.slane %v2102_v37, %v7047_v12 }
 0x1c8   :  { %4328 = vmatpush1.bf16.msra.mxu1 %v6998_v18  ;;  %v7044_v18 = vld [vmem:[#allocation11_spill] sm:$0xff] }
 0x1c9   :  { %4236 = vmatpush1.bf16.msra.mxu0 %v6999_v19  ;;  %4330 = vmatprep.subr.bf16.mxu1 %v7041_v43  ;;  %v2107_v19 = vrot.slane %v2102_v37, %v7044_v18  ;;  %v2178_v8 = vrot.slane %v2173_v28, %v7044_v18  ;;  %v2249_v27 = vrot.slane %v2244_v14, %v7044_v18 }
 0x1ca   :  { %1314 = vmatprep.subr.mxu0 %v7042_v34  ;;  %v2320_v62 = vrot.slane %v2315_v33, %v7044_v18  ;;  %v2399_v11 = vrot.slane %v2394_v55, %v7044_v18  ;;  %v2470_v30 = vrot.slane %v2465_v23, %v7044_v18  ;;  %v2541_v57 = vrot.slane %v2536_v3, %v7044_v18 }
 0x1cb   :  { %v2612_v52 = vrot.slane %v2607_v1, %v7044_v18 }
 0x1cc   :  { %4332 = vmatpush1.bf16.msra.mxu1 %v7043_v58 }
 0x1cd   :  { %1316 = vmatpush1.msra.mxu0 %v7005_v45  ;;  %1987 = vmatprep.subr.mxu1 %v5418_v0 }
 0x1ce   :  { %1365 = vmatmul.mubr.f32.vlgmr.msra.gmra.mrb[0].mxu0 %v5035_v60 }
 0x1cf   :  { %2801 = vmatprep.mubr.f32.mxu0 %v6966_v48 }
 0x1d0   :  { %1989 = vmatpush1.msra.mxu1 %v5420_v54 }
 0x1d1   :  { %2038 = vmatmul.mubr.f32.vlgmr.msra.gmra.mrb[0].mxu1 %v5035_v60 }
 0x1d2   :  { %3474 = vmatprep.mubr.f32.mxu1 %v6966_v48 }
 0x1fe   :  { %v692_v2 = vpop.permute.xlu0 %691 }
 0x2a1   :  { %v1366_v38 = vpop.f32.mrb[0].mxu0 }
 0x2a2   :  { %v5666_v4 = vadd.f32 %v1366_v38, %v692_v2  ;;  %v1368_v36 = vpop.f32.mrb[1].mxu0 }
 0x2a3   :  { %v5668_v63 = vadd.f32 %v1368_v36, %v692_v2 }
 0x2a4   :  { %v2039_v45 = vpop.f32.mrb[0].mxu1  ;;  %v2049_v0 = vmul.f32 %v5666_v4, %v5666_v4 }
 0x2a5   :  { %v2044_v24 = vadd.f32 %v5668_v63, %v5666_v4  ;;  %v2050_v54 = vmul.f32 %v5668_v63, %v5668_v63  ;;  %v5676_v60 = vadd.f32 %v2039_v45, %v692_v2  ;;  %v2041_v31 = vpop.f32.mrb[1].mxu1 }
 0x2a6   :  { %v5678_v6 = vadd.f32 %v2041_v31, %v692_v2 }
 0x2a7   :  { %v2051_v16 = vmul.f32 %v5676_v60, %v5676_v60  ;;  %v2045_v50 = vadd.f32 %v5676_v60, %v2044_v24  ;;  %v2053_v51 = vadd.f32 %v2050_v54, %v2049_v0 }
 0x2a8   :  { %v2052_v32 = vmul.f32 %v5678_v6, %v5678_v6 }
 0x2a9   :  { %v2046_v40 = vadd.f32 %v5678_v6, %v2045_v50  ;;  %v2054_v25 = vadd.f32 %v2053_v51, %v2051_v16 }
 0x2ab   :  { %2047 = vadd.xlane.f32.xlu1 %v2046_v40  ;;  %v2055_v56 = vadd.f32 %v2054_v25, %v2052_v32  ;;  %v2068_v25 = vld [vmem:[%s6723_s4] sm:$0xff] }
 0x2ad   :  { %2056 = vadd.xlane.f32.xlu0 %v2055_v56 }
 0x2bc   :  { %2120 = vrot.lane.b32.xlu1 %v2107_v19, %s4644_s27 }
 0x2c0   :  { %2122 = vrot.lane.b32.xlu1 %v2111_v13, %s4644_s27 }
 0x2c3   :  { %2082 = vperm.xlu0 %4587, %v2079_v49   ;;  %v2549_v49 = vrot.slane %v2536_v3, %v7046_v5 }
 0x2c4   :  { %2191 = vrot.lane.b32.xlu1 %v2178_v8, %s4645_s1 }
 0x2c7   :  { %2124 = vrot.lane.b32.xlu0 %v2115_v17, %s4644_s27 }
 0x2c8   :  { %2195 = vrot.lane.b32.xlu1 %v2186_v44, %s4645_s1  ;;  %v2553_v44 = vrot.slane %v2536_v3, %v7047_v12 }
 0x2cb   :  { %2193 = vrot.lane.b32.xlu0 %v2182_v53, %s4645_s1 }
 0x2cc   :  { %2197 = vrot.lane.b32.xlu1 %v2190_v9, %s4645_s1 }
 0x2cf   :  { %2126 = vrot.lane.b32.xlu0 %v2119_v46, %s4644_s27 }
 0x2d0   :  { %2264 = vrot.lane.b32.xlu1 %v2253_v61, %s4646_s28  ;;  %v2616_v61 = vrot.slane %v2607_v1, %v7045_v22 }
 0x2d3   :  { %2262 = vrot.lane.b32.xlu0 %v2249_v27, %s4646_s28 }
 0x2d4   :  { %2333 = vrot.lane.b32.xlu1 %v2320_v62, %s4647_s29  ;;  %v2624_v62 = vrot.slane %v2607_v1, %v7047_v12 }
 0x2d7   :  { %2266 = vrot.lane.b32.xlu0 %v2257_v35, %s4646_s28 }
 0x2d8   :  { %2337 = vrot.lane.b32.xlu1 %v2328_v39, %s4647_s29 }
 0x2db   :  { %2335 = vrot.lane.b32.xlu0 %v2324_v29, %s4647_s29 }
 0x2dc   :  { %2339 = vrot.lane.b32.xlu1 %v2332_v10, %s4647_s29 }
 0x2df   :  { %2268 = vrot.lane.b32.xlu0 %v2261_v26, %s4646_s28 }
 0x2e0   :  { %2414 = vrot.lane.b32.xlu1 %v2403_v41, %s4648_s30 }
 0x2e3   :  { %2412 = vrot.lane.b32.xlu0 %v2399_v11, %s4648_s30 }
 0x2e4   :  { %2418 = vrot.lane.b32.xlu1 %v2411_v20, %s4648_s30 }
 0x2e7   :  { %2416 = vrot.lane.b32.xlu0 %v2407_v59, %s4648_s30 }
 0x2e8   :  { %2485 = vrot.lane.b32.xlu1 %v2474_v15, %s4649_s11 }
 0x2eb   :  { %2483 = vrot.lane.b32.xlu0 %v2470_v30, %s4649_s11 }
 0x2ec   :  { %2554 = vrot.lane.b32.xlu1 %v2541_v57, %s4650_s12 }
 0x2ef   :  { %2487 = vrot.lane.b32.xlu0 %v2478_v7, %s4649_s11 }
 0x2f3   :  { %2556 = vrot.lane.b32.xlu0 %v2545_v47, %s4650_s12 }
 0x2f7   :  { %2489 = vrot.lane.b32.xlu0 %v2482_v42, %s4649_s11 }
 0x2fb   :  { %2625 = vrot.lane.b32.xlu0 %v2612_v52, %s4651_s13 }
 0x2ff   :  { %2629 = vrot.lane.b32.xlu0 %v2620_v21, %s4651_s13 }
 0x338   :  { %v2048_v43 = vpop.xlane.xlu1 %2047 }
 0x339   :  { %v5745_v34 = vmul.f32 0.001953125, %v2048_v43 }
 0x33a   :  { %v2057_v58 = vpop.xlane.xlu0 %2056 }
 0x33b   :  { %v2059_v2 = vmul.f32 0.001953125, %v2057_v58  ;;  %v2060_v38 = vmul.f32 %v5745_v34, %v5745_v34  ;;  %v2064_v21 = vsub.f32 %v5666_v4, %v5745_v34  ;;  %v2065_v43 = vsub.f32 %v5668_v63, %v5745_v34 }
 0x33c   :  { %v2121_v36 = vpop.permute.xlu1 %2120  ;;  %v2066_v58 = vsub.f32 %v5676_v60, %v5745_v34 }
 0x33d   :  { %v2061_v45 = vsub.f32 %v2059_v2, %v2060_v38  ;;  %v2136_v0 = vmul.f32 0.0, %v2121_v36  ;;  %v2067_v2 = vsub.f32 %v5678_v6, %v5745_v34 }
 0x33f   :  { %v2062_v24 = vadd.f32 1e-05, %v2061_v45  ;;  %2146 = vrot.lane.b32.xlu0 %v2136_v0, %s4651_s13 }
 0x340   :  { %v2123_v54 = vpop.permute.xlu1 %2122 }
 0x341   :  { %4589 = vrsqrt.f32 %v2062_v24  ;;  %v5751_v31 = vsel %vm91_vm0, %v2121_v36, %v2123_v54 }
 0x342   :  { %v5753_v16 = vpop.permute.xlu0 %2082 }
 0x344   :  { %v2192_v50 = vpop.permute.xlu1 %2191 }
 0x345   :  { %v2207_v22 = vmul.f32 0.0, %v2192_v50 }
 0x346   :  { %v5755_v51 = vpop.permute.xlu0 %2124 }
 0x347   :  { %v5759_v32 = vsel %vm91_vm0, %v2123_v54, %v5755_v51 }
 0x348   :  { %v5761_v40 = vpop.permute.xlu1 %2195 }
 0x34a   :  { %v2194_v56 = vpop.permute.xlu0 %2193 }
 0x34b   :  { %v4590_v37 = vpop.eup %4589  ;;  %v5767_v18 = vsel %vm165_vm1, %v2192_v50, %v2194_v56  ;;  %v5771_v19 = vsel %vm165_vm1, %v2194_v56, %v5761_v40 }
 0x34c   :  { %v2069_v13 = vmul.f32 %v4590_v37, %v2068_v25  ;;  %v5773_v28 = vpop.permute.xlu1 %2197 }
 0x34e   :  { %2072 = vperm.xlu1 %4588, %v2069_v13   ;;  %v5776_v8 = vpop.permute.xlu0 %2126 }
 0x350   :  { %v2265_v17 = vpop.permute.xlu1 %2264 }
 0x352   :  { %2558 = vrot.lane.b32.xlu1 %v2549_v49, %s4650_s12  ;;  %v2263_v53 = vpop.permute.xlu0 %2262 }
 0x353   :  { %v2278_v9 = vmul.f32 0.0, %v2263_v53  ;;  %v5781_v14 = vsel %vm239_vm2, %v2263_v53, %v2265_v17 }
 0x354   :  { %v2334_v46 = vpop.permute.xlu1 %2333 }
 0x355   :  { %2288 = vrot.lane.b32.xlu0 %v2278_v9, %s4649_s11  ;;  %v2349_v41 = vmul.f32 0.0, %v2334_v46  ;;  %v2201_v9 = vsel %vm165_vm1, %v5761_v40, %v5773_v28 }
 0x356   :  { %2560 = vrot.lane.b32.xlu1 %v2553_v44, %s4650_s12  ;;  %v5786_v5 = vpop.permute.xlu0 %2266 }
 0x357   :  { %v2271_v33 = vsel %vm239_vm2, %v2265_v17, %v5786_v5 }
 0x358   :  { %v2338_v27 = vpop.permute.xlu1 %2337 }
 0x35a   :  { %2627 = vrot.lane.b32.xlu1 %v2616_v61, %s4651_s13  ;;  %v2336_v35 = vpop.permute.xlu0 %2335 }
 0x35b   :  { %v5793_v39 = vsel %vm313_vm3, %v2334_v46, %v2336_v35  ;;  %v2342_v29 = vsel %vm313_vm3, %v2336_v35, %v2338_v27 }
 0x35c   :  { %v5796_v10 = vpop.permute.xlu1 %2339 }
 0x35d   :  { %v2343_v46 = vsel %vm313_vm3, %v2338_v27, %v5796_v10 }
 0x35e   :  { %2631 = vrot.lane.b32.xlu1 %v2624_v62, %s4651_s13  ;;  %v5799_v26 = vpop.permute.xlu0 %2268 }
 0x360   :  { %v2415_v55 = vpop.permute.xlu1 %2414 }
 0x362   :  { %2217 = vrot.lane.b32.xlu1 %v2207_v22, %s4650_s12  ;;  %v5802_v11 = vpop.permute.xlu0 %2412 }
 0x363   :  { %v2420_v40 = vsel %vm342_vm4, %v5802_v11, %v2415_v55 }
 0x364   :  { %v2419_v12 = vpop.permute.xlu1 %2418 }
 0x365   :  { %v2432_v20 = vmul.f32 0.0, %v2419_v12 }
 0x366   :  { %2359 = vrot.lane.b32.xlu1 %v2349_v41, %s4648_s30  ;;  %v2417_v59 = vpop.permute.xlu0 %2416 }
 0x367   :  { %v2421_v23 = vsel %vm342_vm4, %v2415_v55, %v2417_v59  ;;  %v2422_v15 = vsel %vm342_vm4, %v2417_v59, %v2419_v12  ;;  %2446 = vrot.lane.b32.xlu0 %v2432_v20, %s4647_s29 }
 0x368   :  { %v5814_v1 = vpop.permute.xlu1 %2485 }
 0x36a   :  { %v5808_v3 = vpop.permute.xlu0 %2483 }
 0x36c   :  { %v5816_v52 = vpop.permute.xlu1 %2554 }
 0x36e   :  { %v2488_v30 = vpop.permute.xlu0 %2487 }
 0x36f   :  { %v2492_v55 = vsel %vm268_vm5, %v5814_v1, %v2488_v30 }
 0x372   :  { %v5810_v57 = vpop.permute.xlu0 %2556 }
 0x373   :  { %v2562_v59 = vsel %vm194_vm6, %v5816_v52, %v5810_v57 }
 0x376   :  { %v2490_v7 = vpop.permute.xlu0 %2489 }
 0x377   :  { %v2493_v47 = vsel %vm268_vm5, %v2488_v30, %v2490_v7  ;;  %v2503_v42 = vmul.f32 0.0, %v2490_v7 }
 0x379   :  { %2517 = vrot.lane.b32.xlu0 %v2503_v42, %s4646_s28 }
 0x37a   :  { %v2626_v30 = vpop.permute.xlu0 %2625 }
 0x37e   :  { %v2630_v42 = vpop.permute.xlu0 %2629 }
 0x3cd   :  { %v2073_v38 = vpop.permute.xlu1 %2072 }
 0x3ce   :  { %v2075_v36 = vmul.f32 %v2073_v38, %v2064_v21  ;;  %v2076_v45 = vmul.f32 %v2073_v38, %v2065_v43  ;;  %v2077_v0 = vmul.f32 %v2073_v38, %v2066_v58  ;;  %v2078_v24 = vmul.f32 %v2073_v38, %v2067_v2 }
 0x3d0   :  { %v2085_v54 = vadd.f32 %v5753_v16, %v2075_v36  ;;  %v2086_v50 = vadd.f32 %v5753_v16, %v2076_v45  ;;  %v2087_v4 = vadd.f32 %v5753_v16, %v2077_v0  ;;  %v2088_v25 = vadd.f32 %v5753_v16, %v2078_v24  ;;  %v2710_v45 = vld [vmem:[%s6726_s7] sm:$0xff]  ;;  %v2147_v24 = vpop.permute.xlu0 %2146 }
 0x3d1   :  { %v5830_v63 = vpop.permute.xlu1 %2558  ;;  %v2130_v16 = vsel %vm91_vm0, %v5755_v51, %v5776_v8 }
 0x3d2   :  { %v5832_v56 = vmax.f32 %v2085_v54, 0.0  ;;  %v5834_v60 = vmax.f32 %v2086_v50, 0.0  ;;  %v5836_v6 = vmax.f32 %v2087_v4, 0.0  ;;  %v5838_v34 = vmax.f32 %v2088_v25, 0.0 }
 0x3d4   :  { %v5841_v37 = vmul.f32 %v2493_v47, %v5838_v34  ;;  %v2138_v13 = vmul.f32 %v5759_v32, %v5834_v60  ;;  %v2209_v17 = vmul.f32 %v5771_v19, %v5834_v60  ;;  %v2137_v44 = vmul.f32 %v5751_v31, %v5832_v56  ;;  %v2289_v54 = vpop.permute.xlu0 %2288 }
 0x3d5   :  { %v5848_v49 = vpop.permute.xlu1 %2560  ;;  %v2208_v53 = vmul.f32 %v5767_v18, %v5832_v56  ;;  %v2139_v51 = vmul.f32 %v2130_v16, %v5836_v6  ;;  %v2280_v19 = vmul.f32 %v2271_v33, %v5834_v60  ;;  %v2210_v31 = vmul.f32 %v2201_v9, %v5836_v6 }
 0x3d6   :  { %v2574_v32 = vmul.f32 0.0, %v5848_v49  ;;  %2150 = vrot.lane.b32.xlu1 %v2138_v13, %s4651_s13  ;;  %v2351_v61 = vmul.f32 %v2342_v29, %v5834_v60  ;;  %v2272_v18 = vsel %vm239_vm2, %v5786_v5, %v5799_v26  ;;  %v2279_v62 = vmul.f32 %v5781_v14, %v5832_v56 }
 0x3d7   :  { %v2350_v27 = vmul.f32 %v5793_v39, %v5832_v56  ;;  %v2281_v33 = vmul.f32 %v2272_v18, %v5836_v6  ;;  %v2430_v35 = vmul.f32 %v2421_v23, %v5836_v6  ;;  %v2352_v29 = vmul.f32 %v2343_v46, %v5836_v6 }
 0x3d8   :  { %2588 = vrot.lane.b32.xlu0 %v2574_v32, %s4645_s1  ;;  %v2431_v22 = vmul.f32 %v2422_v15, %v5838_v34  ;;  %v2429_v5 = vmul.f32 %v2420_v40, %v5834_v60  ;;  %v2140_v14 = vmul.f32 %v5776_v8, %v5838_v34  ;;  %v2501_v39 = vmul.f32 %v2492_v55, %v5836_v6 }
 0x3d9   :  { %v2570_v41 = vmul.f32 %v5816_v52, %v5832_v56  ;;  %v2211_v12 = vmul.f32 %v5773_v28, %v5838_v34  ;;  %v2282_v8 = vmul.f32 %v5799_v26, %v5838_v34  ;;  %v2353_v28 = vmul.f32 %v5796_v10, %v5838_v34  ;;  %v2628_v47 = vpop.permute.xlu1 %2627  ;;  %v5958_v4 = vpop.permute.xlu0 %2446 }
 0x3da   :  { %2221 = vrot.lane.b32.xlu1 %v2209_v17, %s4650_s12  ;;  %v2491_v26 = vsel %vm268_vm5, %v5808_v3, %v5814_v1  ;;  %v2428_v10 = vmul.f32 %v5802_v11, %v5832_v56  ;;  %v2571_v23 = vmul.f32 %v2562_v59, %v5834_v60  ;;  %v2563_v15 = vsel %vm194_vm6, %v5810_v57, %v5830_v63 }
 0x3db   :  { %v2500_v20 = vmul.f32 %v2491_v26, %v5834_v60  ;;  %v2499_v11 = vmul.f32 %v5808_v3, %v5832_v56  ;;  %v2572_v7 = vmul.f32 %v2563_v15, %v5836_v6  ;;  %v2564_v1 = vsel %vm194_vm6, %v5830_v63, %v5848_v49 }
 0x3dc   :  { %2148 = vrot.lane.b32.xlu0 %v2137_v44, %s4651_s13  ;;  %v2634_v57 = vsel %vm120_vm7, %v2628_v47, %v2630_v42  ;;  %v2573_v52 = vmul.f32 %v2564_v1, %v5838_v34  ;;  %v2633_v21 = vsel %vm120_vm7, %v2626_v30, %v2628_v47  ;;  %v2641_v36 = vmul.f32 %v2626_v30, %v5832_v56 }
 0x3dd   :  { %v2632_v3 = vpop.permute.xlu1 %2631  ;;  %v2643_v43 = vmul.f32 %v2634_v57, %v5836_v6  ;;  %v2642_v2 = vmul.f32 %v2633_v21, %v5834_v60  ;;  %v6831_v59 = vand.u32 4294901760, %v5834_v60 }
 0x3de   :  { %2154 = vrot.lane.b32.xlu1 %v2140_v14, %s4651_s13  ;;  %v2635_v58 = vsel %vm120_vm7, %v2630_v42, %v2632_v3  ;;  %v2645_v0 = vmul.f32 0.0, %v2632_v3 }
 0x3df   :  { %v2644_v38 = vmul.f32 %v2635_v58, %v5838_v34  ;;  %v6044_v3 = vsub.f32 %v5834_v60, %v6831_v59 }
 0x3e0   :  { %2219 = vrot.lane.b32.xlu0 %v2208_v53, %s4650_s12 }
 0x3e1   :  { %v2218_v50 = vpop.permute.xlu1 %2217  ;;  %7055 = vst [vmem:[#allocation22_spill] sm:$0xff] %v6044_v3 }
 0x3e2   :  { %2225 = vrot.lane.b32.xlu1 %v2211_v12, %s4650_s12 }
 0x3e4   :  { %2152 = vrot.lane.b32.xlu0 %v2139_v51, %s4651_s13 }
 0x3e5   :  { %v2360_v25 = vpop.permute.xlu1 %2359 }
 0x3e6   :  { %2292 = vrot.lane.b32.xlu1 %v2280_v19, %s4649_s11 }
 0x3e8   :  { %2223 = vrot.lane.b32.xlu0 %v2210_v31, %s4650_s12 }
 0x3ea   :  { %2363 = vrot.lane.b32.xlu1 %v2351_v61, %s4648_s30 }
 0x3eb   :  { %v5960_v63 = vpop.permute.xlu0 %2517 }
 0x3ec   :  { %2290 = vrot.lane.b32.xlu0 %v2279_v62, %s4649_s11 }
 0x3ee   :  { %2296 = vrot.lane.b32.xlu1 %v2282_v8, %s4649_s11 }
 0x3f0   :  { %2361 = vrot.lane.b32.xlu0 %v2350_v27, %s4648_s30 }
 0x3f2   :  { %2367 = vrot.lane.b32.xlu1 %v2353_v28, %s4648_s30 }
 0x3f4   :  { %2294 = vrot.lane.b32.xlu0 %v2281_v33, %s4649_s11 }
 0x3f6   :  { %2442 = vrot.lane.b32.xlu1 %v2430_v35, %s4647_s29 }
 0x3f8   :  { %2365 = vrot.lane.b32.xlu0 %v2352_v29, %s4648_s30 }
 0x3fa   :  { %2444 = vrot.lane.b32.xlu1 %v2431_v22, %s4647_s29 }
 0x3fc   :  { %2440 = vrot.lane.b32.xlu0 %v2429_v5, %s4647_s29  ;;  %v3410_v5 = vand.u32 4294901760, %v5836_v6 }
 0x3fe   :  { %2511 = vrot.lane.b32.xlu1 %v2500_v20, %s4646_s28 }
 0x400   :  { %2438 = vrot.lane.b32.xlu0 %v2428_v10, %s4647_s29  ;;  %v3408_v10 = vand.u32 4294901760, %v5838_v34 }
 0x402   :  { %2582 = vrot.lane.b32.xlu1 %v2571_v23, %s4645_s1 }
 0x404   :  { %2513 = vrot.lane.b32.xlu0 %v2501_v39, %s4646_s28  ;;  %v6825_v39 = vand.u32 4294901760, %v5832_v56 }
 0x406   :  { %2509 = vrot.lane.b32.xlu1 %v2499_v11, %s4646_s28  ;;  %v6020_v11 = vsub.f32 %v5836_v6, %v3410_v5  ;;  %v6027_v42 = vsub.f32 %v5832_v56, %v6825_v39 }
 0x408   :  { %2584 = vrot.lane.b32.xlu0 %v2572_v7, %s4645_s1  ;;  %7052 = vst [vmem:[#allocation14_spill] sm:$0xff] %v6020_v11  ;;  %7053 = vst [vmem:[#allocation39_spill] sm:$0xff] %v6027_v42  ;;  %v6820_v58 = vand.u32 4294901760, %v6020_v11 }
 0x40a   :  { %2515 = vrot.lane.b32.xlu1 %v5841_v37, %s4646_s28 }
 0x40c   :  { %2580 = vrot.lane.b32.xlu0 %v2570_v41, %s4645_s1  ;;  %v2673_v41 = vld [vmem:[%s6725_s6] sm:$0xff] }
 0x40d   :  { %v2717_v7 = vsel %vm694_vm8, %v2673_v41, 0 }
 0x40e   :  { %2586 = vrot.lane.b32.xlu1 %v2573_v52, %s4645_s1  ;;  %v6039_v52 = vsub.f32 %v5838_v34, %v3408_v10  ;;  %v6046_v21 = vand.u32 4294901760, %v2717_v7 }
 0x410   :  { %2655 = vrot.lane.b32.xlu0 %v2643_v43, %s4644_s27  ;;  %7054 = vst [vmem:[#allocation15_spill] sm:$0xff] %v6039_v52 }
 0x412   :  { %2653 = vrot.lane.b32.xlu1 %v2642_v2, %s4644_s27 }
 0x414   :  { %2657 = vrot.lane.b32.xlu0 %v2644_v38, %s4644_s27 }
 0x416   :  { %2651 = vrot.lane.b32.xlu1 %v2641_v36, %s4644_s27 }
 0x418   :  { %2713 = vperm.xlu0 %4587, %v2710_v45  }
 0x41a   :  { %2659 = vrot.lane.b32.xlu1 %v2645_v0, %s4644_s27 }
 0x448   :  { %v2151_v37 = vpop.permute.xlu1 %2150 }
 0x44a   :  { %v5962_v13 = vpop.permute.xlu0 %2588 }
 0x44c   :  { %v2222_v16 = vpop.permute.xlu1 %2221 }
 0x44e   :  { %v2149_v49 = vpop.permute.xlu0 %2148 }
 0x44f   :  { %v5965_v44 = vsel %vm120_vm7, %v2147_v24, %v2149_v49  ;;  %v2157_v53 = vsel %vm120_vm7, %v2149_v49, %v2151_v37 }
 0x450   :  { %v2155_v17 = vpop.permute.xlu1 %2154  ;;  %v2721_v46 = vand.u32 4294901760, %v5965_v44  ;;  %v2719_v18 = vand.u32 4294901760, %v2157_v53 }
 0x452   :  { %v2220_v9 = vpop.permute.xlu0 %2219 }
 0x453   :  { %v5969_v32 = vsel %vm194_vm6, %v2218_v50, %v2220_v9  ;;  %v2228_v51 = vsel %vm194_vm6, %v2220_v9, %v2222_v16  ;;  %v6823_v50 = vand.u32 4294901760, %v6044_v3  ;;  %v6071_v9 = vsub.f32 %v2717_v7, %v6046_v21 }
 0x454   :  { %v2723_v19 = vand.u32 4294901760, %v2228_v51  ;;  %v2725_v31 = vand.u32 4294901760, %v5969_v32  ;;  %v2226_v61 = vpop.permute.xlu1 %2225 }
 0x455   :  { %7058 = vst [vmem:[#allocation19_spill] sm:$0xff] %v6071_v9  ;;  %v6090_v7 = vsub.f32 %v6044_v3, %v6823_v50 }
 0x456   :  { %v5978_v40 = vpack.c.bf16 %v2725_v31, %v2721_v46  ;;  %v2153_v62 = vpop.permute.xlu0 %2152  ;;  %v5980_v27 = vpack.c.bf16 %v2723_v19, %v2719_v18 }
 0x457   :  { %v5983_v35 = vsel %vm120_vm7, %v2151_v37, %v2153_v62  ;;  %v5986_v29 = vsel %vm120_vm7, %v2153_v62, %v2155_v17  ;;  %v6821_v37 = vand.u32 4294901760, %v6027_v42  ;;  %v6078_v62 = vsub.f32 %v2157_v53, %v2719_v18 }
 0x458   :  { %7048 = vst [vmem:[#allocation25_spill] sm:$0xff] %v5978_v40  ;;  %7049 = vst [vmem:[#allocation16_spill] sm:$0xff] %v5980_v27  ;;  %v2293_v33 = vpop.permute.xlu1 %2292  ;;  %4334 = vmatprep.subr.bf16.mxu0 %v5980_v27  ;;  %v3392_v12 = vand.u32 4294901760, %v5986_v29  ;;  %v3394_v8 = vand.u32 4294901760, %v5983_v35 }
 0x459   :  { %4336 = vmatpush1.bf16.msra.mxu0 %v5978_v40  ;;  %v6095_v53 = vsub.f32 %v6027_v42, %v6821_v37  ;;  %v6833_v37 = vand.u32 4294901760, %v6078_v62 }
 0x45a   :  { %v2224_v22 = vpop.permute.xlu0 %2223 }
 0x45b   :  { %v5992_v55 = vsel %vm194_vm6, %v2222_v16, %v2224_v22  ;;  %v5995_v14 = vsel %vm194_vm6, %v2224_v22, %v2226_v61  ;;  %v6822_v16 = vand.u32 4294901760, %v6039_v52  ;;  %v6076_v61 = vsub.f32 %v6020_v11, %v6820_v58 }
 0x45c   :  { %v3396_v28 = vand.u32 4294901760, %v5995_v14  ;;  %v3398_v26 = vand.u32 4294901760, %v5992_v55  ;;  %v2364_v20 = vpop.permute.xlu1 %2363  ;;  %v6080_v22 = vsub.f32 %v2228_v51, %v2723_v19  ;;  %v6105_v19 = vsub.f32 %v5969_v32, %v2725_v31 }
 0x45d   :  { %v6100_v51 = vsub.f32 %v6039_v52, %v6822_v16  ;;  %v6118_v16 = vsub.f32 %v5965_v44, %v2721_v46 }
 0x45e   :  { %v6011_v23 = vpack.c.bf16 %v3398_v26, %v3394_v8  ;;  %v2291_v15 = vpop.permute.xlu0 %2290  ;;  %v6015_v30 = vpack.c.bf16 %v3396_v28, %v3392_v12  ;;  %v6832_v31 = vand.u32 4294901760, %v6080_v22  ;;  %v6131_v39 = vsub.f32 %v5995_v14, %v3396_v28 }
 0x45f   :  { %v6030_v1 = vsel %vm268_vm5, %v2289_v54, %v2291_v15  ;;  %v6033_v57 = vsel %vm268_vm5, %v2291_v15, %v2293_v33 }
 0x460   :  { %7050 = vst [vmem:[#allocation17_spill] sm:$0xff] %v6011_v23  ;;  %7051 = vst [vmem:[#allocation35_spill] sm:$0xff] %v6015_v30  ;;  %4430 = vmatprep.subr.bf16.mxu1 %v6015_v30  ;;  %v2297_v47 = vpop.permute.xlu1 %2296  ;;  %v2727_v36 = vand.u32 4294901760, %v6033_v57  ;;  %v2729_v45 = vand.u32 4294901760, %v6030_v1 }
 0x461   :  { %4432 = vmatpush1.bf16.msra.mxu1 %v6011_v23 }
 0x462   :  { %v2362_v43 = vpop.permute.xlu0 %2361 }
 0x463   :  { %v6050_v2 = vsel %vm342_vm4, %v2360_v25, %v2362_v43  ;;  %v6053_v38 = vsel %vm342_vm4, %v2362_v43, %v2364_v20  ;;  %v6111_v43 = vand.u32 4294901760, %v6071_v9 }
 0x464   :  { %v6824_v0 = vand.u32 4294901760, %v6053_v38  ;;  %v6826_v24 = vand.u32 4294901760, %v6050_v2  ;;  %v2368_v54 = vpop.permute.xlu1 %2367 }
 0x465   :  { %7059 = vst [vmem:[#allocation20_spill] sm:$0xff] %v6111_v43 }
 0x466   :  { %v6064_v25 = vpack.c.bf16 %v6826_v24, %v2729_v45  ;;  %v2295_v49 = vpop.permute.xlu0 %2294  ;;  %v6068_v17 = vpack.c.bf16 %v6824_v0, %v2727_v36 }
 0x467   :  { %v6084_v15 = vsel %vm268_vm5, %v2293_v33, %v2295_v49  ;;  %v6108_v18 = vsel %vm268_vm5, %v2295_v49, %v2297_v47 }
 0x468   :  { %7056 = vst [vmem:[#allocation28_spill] sm:$0xff] %v6064_v25  ;;  %7057 = vst [vmem:[#allocation18_spill] sm:$0xff] %v6068_v17  ;;  %4338 = vmatprep.subr.bf16.mxu0 %v6068_v17  ;;  %v2443_v41 = vpop.permute.xlu1 %2442  ;;  %v6828_v47 = vand.u32 4294901760, %v6084_v15  ;;  %v6830_v44 = vand.u32 4294901760, %v6108_v18 }
 0x469   :  { %4340 = vmatpush1.bf16.msra.mxu0 %v6064_v25 }
 0x46a   :  { %v2366_v33 = vpop.permute.xlu0 %2365 }
 0x46b   :  { %v6121_v50 = vsel %vm342_vm4, %v2364_v20, %v2366_v33  ;;  %v6124_v32 = vsel %vm342_vm4, %v2366_v33, %v2368_v54  ;;  %v6835_v54 = vand.u32 4294901760, %v6105_v19  ;;  %v6145_v33 = vsub.f32 %v5983_v35, %v3394_v8 }
 0x46c   :  { %v6829_v49 = vand.u32 4294901760, %v6124_v32  ;;  %v6827_v58 = vand.u32 4294901760, %v6121_v50  ;;  %v2445_v0 = vpop.permute.xlu1 %2444  ;;  %v7085_v30 = vand.u32 4294901760, %v6124_v32 }
 0x46d   :  { %v6135_v46 = vsel %vm313_vm3, %v2443_v41, %v2445_v0  ;;  %v6139_v20 = vsel %vm313_vm3, %v2445_v0, %v5958_v4  ;;  %v6157_v4 = vsub.f32 %v5986_v29, %v3392_v12  ;;  %v6162_v0 = vsub.f32 %v5992_v55, %v3398_v26 }
 0x46e   :  { %v6151_v14 = vpack.c.bf16 %v6827_v58, %v6828_v47  ;;  %v6834_v28 = vand.u32 4294901760, %v6139_v20  ;;  %v2441_v24 = vpop.permute.xlu0 %2440  ;;  %v6171_v8 = vpack.c.bf16 %v6829_v49, %v6830_v44  ;;  %v6836_v58 = vand.u32 4294901760, %v6118_v16 }
 0x46f   :  { %v6165_v35 = vsel %vm313_vm3, %v2441_v24, %v2443_v41  ;;  %v2828_v55 = vsub.f32 %v6080_v22, %v6832_v31  ;;  %v6838_v26 = vand.u32 4294901760, %v6131_v39  ;;  %v6183_v41 = vsub.f32 %v6033_v57, %v2727_v36 }
 0x470   :  { %7060 = vst [vmem:[#allocation29_spill] sm:$0xff] %v6151_v14  ;;  %7061 = vst [vmem:[#allocation23_spill] sm:$0xff] %v6171_v8  ;;  %v6175_v29 = vpop.permute.xlu1 %2511  ;;  %v6186_v49 = vsub.f32 %v6030_v1, %v2729_v45  ;;  %v6837_v44 = vand.u32 4294901760, %v6165_v35  ;;  %4434 = vmatprep.subr.bf16.mxu1 %v6171_v8  ;;  %v6196_v31 = vpack.c.bf16 %v6834_v28, %v3408_v10  ;;  %v7086_v17 = vand.u32 4294901760, %v6165_v35 }
 0x471   :  { %4436 = vmatpush1.bf16.msra.mxu1 %v6151_v14  ;;  %v2816_v1 = vsub.f32 %v6078_v62, %v6833_v37  ;;  %v2805_v57 = vsub.f32 %v6071_v9, %v6111_v43  ;;  %v2834_v36 = vsub.f32 %v6105_v19, %v6835_v54  ;;  %v2822_v10 = vsub.f32 %v6118_v16, %v6836_v58 }
 0x472   :  { %7062 = vst [vmem:[#allocation24_spill] sm:$0xff] %v6186_v49  ;;  %v2439_v47 = vpop.permute.xlu0 %2438  ;;  %7063 = vst [vmem:[#allocation30_spill] sm:$0xff] %v6196_v31  ;;  %v7064_v37 = vand.u32 4294901760, %v6135_v46  ;;  %4438 = vmatprep.subr.bf16.mxu1 %v6196_v31  ;;  %v7066_v54 = vand.u32 4294901760, %v5834_v60  ;;  %v2829_v6 = vand.u32 4294901760, %v2828_v55  ;;  %v7069_v60 = vand.u32 4294901760, %v6050_v2 }
 0x473   :  { %v6209_v34 = vsel %vm313_vm3, %v2439_v47, %v2441_v24  ;;  %v7073_v58 = vand.u32 4294901760, %v6162_v0 }
 0x474   :  { %v6218_v28 = vpack.c.bf16 %v7064_v37, %v3410_v5  ;;  %v6841_v59 = vand.u32 4294901760, %v6209_v34  ;;  %v6226_v24 = vpack.c.bf16 %v6837_v44, %v7066_v54  ;;  %v2583_v47 = vpop.permute.xlu1 %2582  ;;  %v3501_v5 = vsub.f32 %v6131_v39, %v6838_v26 }
 0x475   :  { %v7068_v37 = vand.u32 4294901760, %v6145_v33  ;;  %v6241_v54 = vsub.f32 %v6050_v2, %v7069_v60  ;;  %v7071_v44 = vand.u32 4294901760, %v5832_v56  ;;  %v6255_v43 = vsub.f32 %v6162_v0, %v7073_v58 }
 0x476   :  { %7065 = vst [vmem:[#allocation32_spill] sm:$0xff] %v6218_v28  ;;  %7067 = vst [vmem:[#allocation34_spill] sm:$0xff] %v6226_v24  ;;  %4342 = vmatprep.subr.bf16.mxu0 %v6226_v24  ;;  %4440 = vmatpush1.bf16.msra.mxu1 %v6218_v28  ;;  %v2514_v55 = vpop.permute.xlu0 %2513  ;;  %v2817_v2 = vand.u32 4294901760, %v2816_v1  ;;  %v7074_v56 = vand.u32 4294901760, %v6157_v4  ;;  %v7076_v58 = vand.u32 4294901760, %v6186_v49 }
 0x477   :  { %v6236_v12 = vsub.f32 %v6145_v33, %v7068_v37  ;;  %7070 = vst [vmem:[#allocation33_spill] sm:$0xff] %v6241_v54  ;;  %v6247_v45 = vpack.c.bf16 %v6841_v59, %v7071_v44  ;;  %v2835_v37 = vand.u32 4294901760, %v2834_v36  ;;  %v2823_v44 = vand.u32 4294901760, %v2822_v10 }
 0x478   :  { %v3489_v60 = vsub.f32 %v6157_v4, %v7074_v56  ;;  %v7075_v59 = vand.u32 4294901760, %v6053_v38  ;;  %v2510_v26 = vpop.permute.xlu1 %2509  ;;  %v6266_v36 = vand.u32 4294901760, %v2805_v57  ;;  %v6272_v1 = vsub.f32 %v6186_v49, %v7076_v58 }
 0x479   :  { %7072 = vst [vmem:[#allocation36_spill] sm:$0xff] %v6247_v45  ;;  %4344 = vmatpush1.bf16.msra.mxu0 %v6247_v45  ;;  %v6274_v14 = vpack.c.bf16 %v2829_v6, %v2817_v2  ;;  %v7077_v10 = vand.u32 4294901760, %v6183_v41  ;;  %v7078_v45 = vand.u32 4294901760, %v6084_v15  ;;  %v6290_v58 = vsel %vm239_vm2, %v6175_v29, %v2514_v55 }
 0x47a   :  { %v6263_v31 = vsub.f32 %v6053_v38, %v7075_v59  ;;  %v3502_v59 = vand.u32 4294901760, %v3501_v5  ;;  %v3496_v38 = vand.u32 4294901760, %v6236_v12  ;;  %v2585_v6 = vpop.permute.xlu0 %2584  ;;  %v3508_v2 = vand.u32 4294901760, %v6255_v43 }
 0x47b   :  { %v6279_v56 = vsub.f32 %v6183_v41, %v7077_v10  ;;  %v6286_v28 = vsub.f32 %v6084_v15, %v7078_v45  ;;  %v2591_v10 = vsel %vm165_vm1, %v2583_v47, %v2585_v6  ;;  %v6294_v8 = vpack.c.bf16 %v2835_v37, %v2823_v44 }
 0x47c   :  { %v3490_v5 = vand.u32 4294901760, %v3489_v60  ;;  %v7080_v57 = vand.u32 4294901760, %v6108_v18  ;;  %v7082_v15 = vand.u32 4294901760, %v6121_v50  ;;  %v2747_v23 = vand.u32 4294901760, %v2591_v10  ;;  %v2516_v25 = vpop.permute.xlu1 %2515 }
 0x47d   :  { %7079 = vst [vmem:[#allocation26_spill] sm:$0xff] %v6286_v28  ;;  %v2847_v43 = vand.u32 4294901760, %v6272_v1  ;;  %v2743_v37 = vand.u32 4294901760, %v6290_v58  ;;  %v2841_v60 = vand.u32 4294901760, %v6279_v56  ;;  %v7084_v12 = vand.u32 4294901760, %v6241_v54 }
 0x47e   :  { %v6300_v24 = vsub.f32 %v6108_v18, %v7080_v57  ;;  %v6305_v45 = vsub.f32 %v6121_v50, %v7082_v15  ;;  %v6310_v44 = vpack.c.bf16 %v3502_v59, %v3490_v5  ;;  %v6319_v50 = vsub.f32 %v6124_v32, %v7085_v30  ;;  %v2581_v15 = vpop.permute.xlu0 %2580 }
 0x47f   :  { %v2858_v18 = vsub.f32 %v6241_v54, %v7084_v12  ;;  %v2519_v1 = vsel %vm239_vm2, %v2510_v26, %v6175_v29  ;;  %v6326_v56 = vsub.f32 %v6165_v35, %v7086_v17  ;;  %v6330_v59 = vsel %vm239_vm2, %v2516_v25, %v5960_v63 }
 0x480   :  { %7081 = vst [vmem:[#allocation38_spill] sm:$0xff] %v6300_v24  ;;  %7083 = vst [vmem:[#allocation27_spill] sm:$0xff] %v6305_v45  ;;  %v2590_v5 = vsel %vm165_vm1, %v2581_v15, %v2583_v47  ;;  %v6333_v12 = vpack.c.bf16 %v2747_v23, %v2743_v37  ;;  %v6338_v29 = vsel %vm239_vm2, %v2514_v55, %v2516_v25  ;;  %v2587_v26 = vpop.permute.xlu1 %2586  ;;  %v7089_v57 = vand.u32 4294901760, %v6263_v31 }
 0x481   :  { %7087 = vst [vmem:[#allocation31_spill] sm:$0xff] %v6326_v56  ;;  %v2745_v35 = vand.u32 4294901760, %v2519_v1  ;;  %v2749_v40 = vand.u32 4294901760, %v2590_v5  ;;  %v2592_v63 = vsel %vm165_vm1, %v2585_v6, %v2587_v26  ;;  %v2593_v47 = vsel %vm165_vm1, %v2587_v26, %v5962_v13 }
 0x482   :  { %7088 = vst [vmem:[#allocation37_spill] sm:$0xff] %v6333_v12  ;;  %v2852_v17 = vsub.f32 %v6263_v31, %v7089_v57  ;;  %4346 = vmatprep.subr.bf16.mxu0 %v6333_v12  ;;  %v7090_v15 = vand.u32 4294901760, %v6286_v28  ;;  %v3416_v55 = vand.u32 4294901760, %v6330_v59  ;;  %v3420_v32 = vand.u32 4294901760, %v2593_v47  ;;  %v2656_v27 = vpop.permute.xlu0 %2655 }
 0x483   :  { %v3418_v9 = vand.u32 4294901760, %v6338_v29  ;;  %v6356_v12 = vpack.c.bf16 %v2749_v40, %v2745_v35  ;;  %v3422_v6 = vand.u32 4294901760, %v2592_v63  ;;  %v7092_v13 = vand.u32 4294901760, %v6139_v20 }
 0x484   :  { %v6350_v30 = vsub.f32 %v6286_v28, %v7090_v15  ;;  %v7093_v15 = vand.u32 4294901760, %v6209_v34  ;;  %v2654_v11 = vpop.permute.xlu1 %2653  ;;  %v6368_v52 = vpack.c.bf16 %v3420_v32, %v3416_v55  ;;  %v2853_v57 = vand.u32 4294901760, %v2852_v17 }
 0x485   :  { %7091 = vst [vmem:[#allocation21_spill] sm:$0xff] %v6356_v12  ;;  %v6361_v26 = vsub.f32 %v6139_v20, %v7092_v13  ;;  %v2859_v42 = vand.u32 4294901760, %v2858_v18  ;;  %v7095_v28 = vand.u32 4294901760, %v6305_v45  ;;  %v7096_v54 = vand.u32 4294901760, %v6135_v46  ;;  %4348 = vmatpush1.bf16.msra.mxu0 %v6356_v12 }
 0x486   :  { %v6366_v25 = vsub.f32 %v6209_v34, %v7093_v15  ;;  %7094 = vst [vmem:[#allocation40_spill] sm:$0xff] %v6368_v52  ;;  %v6380_v13 = vpack.c.bf16 %v3422_v6, %v3418_v9  ;;  %v6383_v34 = vsub.f32 %v2591_v10, %v2747_v23  ;;  %v2662_v15 = vsel %vm91_vm0, %v2654_v11, %v2656_v27 }
 0x487   :  { %v6373_v3 = vsub.f32 %v6305_v45, %v7095_v28  ;;  %v6378_v20 = vsub.f32 %v6135_v46, %v7096_v54  ;;  %4442 = vmatprep.subr.bf16.mxu1 %v6368_v52  ;;  %v6387_v18 = vpack.c.bf16 %v3508_v2, %v3496_v38  ;;  %v7098_v28 = vand.u32 4294901760, %v6300_v24 }
 0x488   :  { %7097 = vst [vmem:[#allocation41_spill] sm:$0xff] %v6380_v13  ;;  %v6393_v46 = vand.u32 4294901760, %v2662_v15  ;;  %4444 = vmatpush1.bf16.msra.mxu1 %v6380_v13  ;;  %v7100_v54 = vand.u32 4294901760, %v6326_v56  ;;  %v7101_v10 = vand.u32 4294901760, %v6319_v50  ;;  %v2652_v45 = vpop.permute.xlu1 %2651  ;;  %v4353_v12 = vpack.c.bf16 %v2853_v57, %v2841_v60 }
 0x489   :  { %v3513_v17 = vsub.f32 %v6300_v24, %v7098_v28  ;;  %v6405_v28 = vsub.f32 %v6290_v58, %v2743_v37  ;;  %v3532_v24 = vand.u32 4294901760, %v6373_v3  ;;  %v6409_v49 = vsub.f32 %v2590_v5, %v2749_v40 }
 0x48a   :  { %7099 = vst [vmem:[#allocation42_spill] sm:$0xff] %v6393_v46  ;;  %v2876_v23 = vsub.f32 %v6326_v56, %v7100_v54  ;;  %v3525_v52 = vsub.f32 %v6319_v50, %v7101_v10  ;;  %v2658_v54 = vpop.permute.xlu0 %2657  ;;  %2752 = vmatprep.subr.mxu0 %v6393_v46  ;;  %v4355_v56 = vpack.c.bf16 %v2859_v42, %v2847_v43  ;;  %v6906_v10 = vand.u32 4294901760, %v6383_v34 }
 0x48b   :  { %v6413_v38 = vsub.f32 %v2593_v47, %v3420_v32  ;;  %v2661_v2 = vsel %vm91_vm0, %v2652_v45, %v2654_v11  ;;  %v3514_v58 = vand.u32 4294901760, %v3513_v17  ;;  %v6416_v37 = vsub.f32 %v2519_v1, %v2745_v35 }
 0x48c   :  { %v6418_v60 = vand.u32 4294901760, %v2661_v2  ;;  %v2877_v3 = vand.u32 4294901760, %v2876_v23  ;;  %v3526_v57 = vand.u32 4294901760, %v3525_v52  ;;  %v7102_v40 = vand.u32 4294901760, %v6366_v25  ;;  %v2660_v32 = vpop.permute.xlu1 %2659 }
 0x48d   :  { %v6907_v13 = vand.u32 4294901760, %v6405_v28  ;;  %v6425_v42 = vsub.f32 %v6330_v59, %v3416_v55  ;;  %v2663_v43 = vsel %vm91_vm0, %v2656_v27, %v2658_v54  ;;  %v6896_v11 = vand.u32 4294901760, %v6409_v49 }
 0x48e   :  { %v2882_v5 = vsub.f32 %v6366_v25, %v7102_v40  ;;  %v6429_v45 = vsub.f32 %v2592_v63, %v3422_v6  ;;  %2754 = vmatpush1.msra.mxu0 %v6418_v60  ;;  %v2664_v52 = vsel %vm91_vm0, %v2658_v54, %v2660_v32  ;;  %v7103_v1 = vand.u32 4294901760, %v6361_v26 }
 0x48f   :  { %v6897_v47 = vand.u32 4294901760, %v6413_v38  ;;  %v6438_v59 = vsub.f32 %v2662_v15, %v6393_v46  ;;  %v6440_v55 = vand.u32 4294901760, %v2664_v52  ;;  %4350 = vmatprep.subr.bf16.mxu0 %v6274_v14  ;;  %2807 = vmatmul.mubr.f32.vlgmr.msra.gmra.mrb[2].mxu0 %v6266_v36  ;;  %v2900_v27 = vsub.f32 %v6383_v34, %v6906_v10 }
 0x490   :  { %v3549_v35 = vsub.f32 %v6361_v26, %v7103_v1  ;;  %v7104_v63 = vand.u32 4294901760, %v6378_v20  ;;  %v6898_v17 = vand.u32 4294901760, %v6416_v37  ;;  %v6452_v23 = vsub.f32 %v6338_v29, %v3418_v9  ;;  %4352 = vmatpush1.bf16.msra.mxu0 %v6294_v8  ;;  %2967 = vmatprep.mubr.f32.mxu0 %v6966_v48 }
 0x491   :  { %v6454_v15 = vand.u32 4294901760, %v2663_v43  ;;  %v2883_v14 = vand.u32 4294901760, %v2882_v5  ;;  %v6905_v54 = vand.u32 4294901760, %v6425_v42  ;;  %4354 = vmatprep.subr.bf16.mxu0 %v4353_v12  ;;  %3425 = vmatprep.subr.mxu1 %v6440_v55  ;;  %v4449_v40 = vpack.c.bf16 %v3526_v57, %v3514_v58 }
 0x492   :  { %v3555_v6 = vsub.f32 %v6378_v20, %v7104_v63  ;;  %v2888_v32 = vsub.f32 %v6405_v28, %v6907_v13  ;;  %v2906_v9 = vsub.f32 %v6409_v49, %v6896_v11  ;;  %v6902_v29 = vand.u32 4294901760, %v6429_v45 }
 0x493   :  { %v6468_v8 = vsub.f32 %v2661_v2, %v6418_v60  ;;  %3427 = vmatpush1.msra.mxu1 %v6454_v15  ;;  %v7105_v12 = vand.u32 4294901760, %v6090_v7  ;;  %v2901_v58 = vand.u32 4294901760, %v2900_v27  ;;  %v3550_v57 = vand.u32 4294901760, %v3549_v35 }
 0x494   :  { %4446 = vmatprep.subr.bf16.mxu1 %v6310_v44  ;;  %3480 = vmatmul.mubr.f32.vlgmr.msra.gmra.mrb[2].mxu1 %v6266_v36  ;;  %v6904_v1 = vand.u32 4294901760, %v6438_v59  ;;  %v3573_v63 = vsub.f32 %v6413_v38, %v6897_v47  ;;  %v2894_v2 = vsub.f32 %v6416_v37, %v6898_v17  ;;  %v6903_v11 = vand.u32 4294901760, %v6452_v23 }
 0x495   :  { %v4357_v5 = vpack.c.bf16 %v2877_v3, %v7105_v12  ;;  %v6484_v7 = vsub.f32 %v2664_v52, %v6440_v55  ;;  %4356 = vmatpush1.bf16.msra.mxu0 %v4355_v56  ;;  %4448 = vmatpush1.bf16.msra.mxu1 %v6387_v18  ;;  %v7106_v36 = vand.u32 4294901760, %v6350_v30  ;;  %v3556_v3 = vand.u32 4294901760, %v3555_v6 }
 0x496   :  { %4450 = vmatprep.subr.bf16.mxu1 %v4449_v40  ;;  %v7107_v35 = vand.u32 4294901760, %v6095_v53  ;;  %v2889_v12 = vand.u32 4294901760, %v2888_v32  ;;  %v3561_v47 = vsub.f32 %v6425_v42, %v6905_v54  ;;  %v2907_v17 = vand.u32 4294901760, %v2906_v9  ;;  %3640 = vmatprep.mubr.f32.mxu1 %v6966_v48 }
 0x497   :  { %v4451_v44 = vpack.c.bf16 %v3532_v24, %v7106_v36  ;;  %4358 = vmatprep.subr.bf16.mxu0 %v4357_v5  ;;  %v3579_v56 = vsub.f32 %v6429_v45, %v6902_v29  ;;  %v6498_v18 = vsub.f32 %v2663_v43, %v6454_v15  ;;  %v6901_v24 = vand.u32 4294901760, %v6468_v8 }
 0x498   :  { %v4359_v27 = vpack.c.bf16 %v2883_v14, %v7107_v35  ;;  %v4361_v30 = vpack.c.bf16 %v2901_v58, %v2889_v12  ;;  %v7108_v53 = vand.u32 4294901760, %v6100_v51  ;;  %v2912_v6 = vsub.f32 %v6438_v59, %v6904_v1  ;;  %v7138_v1 = vld [vmem:[#allocation41_spill] sm:$0xff] }
 0x499   :  { %v3574_v14 = vand.u32 4294901760, %v3573_v63  ;;  %v2895_v40 = vand.u32 4294901760, %v2894_v2  ;;  %v3567_v32 = vsub.f32 %v6452_v23, %v6903_v11  ;;  %4452 = vmatpush1.bf16.msra.mxu1 %v4451_v44  ;;  %v6900_v43 = vand.u32 4294901760, %v6484_v7 }
 0x49a   :  { %v4453_v52 = vpack.c.bf16 %v3550_v57, %v7108_v53  ;;  %4360 = vmatpush1.bf16.msra.mxu0 %v4359_v27  ;;  %v7109_v9 = vand.u32 4294901760, %v6076_v61  ;;  %v3562_v5 = vand.u32 4294901760, %v3561_v47  ;;  %v3580_v58 = vand.u32 4294901760, %v3579_v56 }
 0x49b   :  { %4362 = vmatprep.subr.bf16.mxu0 %v4361_v30  ;;  %v6899_v57 = vand.u32 4294901760, %v6498_v18  ;;  %v2918_v63 = vsub.f32 %v6468_v8, %v6901_v24  ;;  %v4363_v2 = vpack.c.bf16 %v2907_v17, %v2895_v40  ;;  %v2913_v36 = vand.u32 4294901760, %v2912_v6  ;;  %v7111_v40 = vld [vmem:[#allocation33_spill] sm:$0xff] }
 0x49c   :  { %4454 = vmatprep.subr.bf16.mxu1 %v4453_v52  ;;  %v4455_v51 = vpack.c.bf16 %v3556_v3, %v7109_v9  ;;  %v4457_v35 = vpack.c.bf16 %v3574_v14, %v3562_v5  ;;  %v3568_v27 = vand.u32 4294901760, %v3567_v32  ;;  %v3585_v44 = vsub.f32 %v6484_v7, %v6900_v43  ;;  %v7110_v14 = vld [vmem:[#allocation24_spill] sm:$0xff]  ;;  %v7112_v9 = vld [vmem:[#allocation22_spill] sm:$0xff] }
 0x49d   :  { %v3591_v61 = vsub.f32 %v6498_v18, %v6899_v57  ;;  %v2919_v47 = vand.u32 4294901760, %v2918_v63  ;;  %v4365_v17 = vpack.c.bf16 %v6080_v22, %v6078_v62  ;;  %v4367_v12 = vpack.c.bf16 %v6105_v19, %v6118_v16  ;;  %v7133_v57 = vld [vmem:[#allocation21_spill] sm:$0xff]  ;;  %v7135_v43 = vld [vmem:[#allocation40_spill] sm:$0xff] }
 0x49e   :  { %4364 = vmatpush1.bf16.msra.mxu0 %v4363_v2  ;;  %4456 = vmatpush1.bf16.msra.mxu1 %v4455_v51  ;;  %v4459_v3 = vpack.c.bf16 %v3580_v58, %v3568_v27  ;;  %v3586_v56 = vand.u32 4294901760, %v3585_v44  ;;  %v4369_v30 = vpack.c.bf16 %v6263_v31, %v6183_v41  ;;  %v4461_v52 = vpack.c.bf16 %v6131_v39, %v6157_v4  ;;  %v7113_v51 = vld [vmem:[#allocation31_spill] sm:$0xff]  ;;  %v7114_v58 = vld [vmem:[#allocation38_spill] sm:$0xff] }
 0x49f   :  { %2914 = vmatprep.subr.mxu0 %v2913_v36  ;;  %4458 = vmatprep.subr.bf16.mxu1 %v4457_v35  ;;  %v3592_v53 = vand.u32 4294901760, %v3591_v61  ;;  %v4463_v6 = vpack.c.bf16 %v6162_v0, %v6145_v33  ;;  %v4371_v32 = vpack.c.bf16 %v7111_v40, %v7110_v14  ;;  %v4373_v5 = vpack.c.bf16 %v7113_v51, %v7112_v9  ;;  %v7115_v2 = vld [vmem:[#allocation26_spill] sm:$0xff]  ;;  %v7116_v36 = vld [vmem:[#allocation27_spill] sm:$0xff] }
 0x4a0   :  { %v4465_v63 = vpack.c.bf16 %v6319_v50, %v7114_v58  ;;  %v4467_v35 = vpack.c.bf16 %v7116_v36, %v7115_v2  ;;  %v7117_v27 = vld [vmem:[#allocation39_spill] sm:$0xff]  ;;  %v4377_v61 = vpack.c.bf16 %v6383_v34, %v6405_v28  ;;  %v7136_v24 = vand.u32 4294901760, %v6078_v62 }
 0x4a1   :  { %v4375_v44 = vpack.c.bf16 %v6366_v25, %v7117_v27  ;;  %v7137_v29 = vand.u32 4294901760, %v6080_v22  ;;  %v7139_v54 = vand.u32 4294901760, %v6118_v16  ;;  %v7140_v10 = vand.u32 4294901760, %v6105_v19 }
 0x4a2   :  { %2920 = vmatpush1.msra.mxu0 %v2919_v47  ;;  %4460 = vmatpush1.bf16.msra.mxu1 %v4459_v3  ;;  %v7118_v47 = vld [vmem:[#allocation15_spill] sm:$0xff]  ;;  %v7144_v22 = vand.u32 4294901760, %v6157_v4  ;;  %v7146_v19 = vand.u32 4294901760, %v7110_v14  ;;  %v7150_v4 = vand.u32 4294901760, %v7112_v9  ;;  %v7157_v9 = vand.u32 4294901760, %v7116_v36 }
 0x4a3   :  { %4366 = vmatprep.subr.bf16.mxu0 %v4365_v17  ;;  %2969 = vmatmul.mubr.f32.vlgmr.msra.gmra.mrb[2].mxu0 %v6046_v21  ;;  %v4469_v3 = vpack.c.bf16 %v6361_v26, %v7118_v47  ;;  %v7119_v17 = vld [vmem:[#allocation14_spill] sm:$0xff]  ;;  %v4397_v11 = vpack.c.bf16 %v7137_v29, %v7136_v24  ;;  %v4399_v13 = vpack.c.bf16 %v7140_v10, %v7139_v54  ;;  %v7145_v29 = vand.u32 4294901760, %v6131_v39 }
 0x4a4   :  { %4368 = vmatpush1.bf16.msra.mxu0 %v4367_v12  ;;  %3587 = vmatprep.subr.mxu1 %v3586_v56  ;;  %v4471_v12 = vpack.c.bf16 %v6378_v20, %v7119_v17  ;;  %v4379_v56 = vpack.c.bf16 %v6409_v49, %v6416_v37  ;;  %v7151_v39 = vand.u32 4294901760, %v7113_v51  ;;  %v7152_v54 = vand.u32 4294901760, %v7114_v58 }
 0x4a5   :  { %4370 = vmatprep.subr.bf16.mxu0 %v4369_v30  ;;  %3075 = vmatprep.mubr.f32.mxu0 %v6966_v48  ;;  %v4473_v30 = vpack.c.bf16 %v6413_v38, %v6425_v42  ;;  %v4493_v16 = vpack.c.bf16 %v7145_v29, %v7144_v22  ;;  %v7153_v24 = vand.u32 4294901760, %v6319_v50  ;;  %v7158_v58 = vand.u32 4294901760, %v6405_v28 }
 0x4a6   :  { %3593 = vmatpush1.msra.mxu1 %v3592_v53  ;;  %v4475_v53 = vpack.c.bf16 %v6429_v45, %v6452_v23  ;;  %v7159_v50 = vand.u32 4294901760, %v6383_v34  ;;  %v7161_v22 = vand.u32 4294901760, %v6361_v26  ;;  %v7164_v29 = vand.u32 4294901760, %v7119_v17 }
 0x4a7   :  { %4462 = vmatprep.subr.bf16.mxu1 %v4461_v52  ;;  %3642 = vmatmul.mubr.f32.vlgmr.msra.gmra.mrb[2].mxu1 %v6046_v21  ;;  %v7120_v52 = vld [vmem:[#allocation16_spill] sm:$0xff]  ;;  %v7165_v28 = vand.u32 4294901760, %v6378_v20  ;;  %v7171_v17 = vand.u32 4294901760, %v6468_v8  ;;  %v7172_v20 = vand.u32 4294901760, %v6484_v7 }
 0x4a8   :  { %4372 = vmatpush1.bf16.msra.mxu0 %v4371_v32  ;;  %4464 = vmatpush1.bf16.msra.mxu1 %v4463_v6  ;;  %v7121_v6 = vld [vmem:[#allocation19_spill] sm:$0xff]  ;;  %v7122_v32 = vld [vmem:[#allocation25_spill] sm:$0xff] }
 0x4a9   :  { %4374 = vmatprep.subr.bf16.mxu0 %v4373_v5  ;;  %4466 = vmatprep.subr.bf16.mxu1 %v4465_v63  ;;  %v7123_v5 = vld [vmem:[#allocation18_spill] sm:$0xff]  ;;  %v7124_v63 = vld [vmem:[#allocation35_spill] sm:$0xff]  ;;  %v4503_v34 = vpack.c.bf16 %v7165_v28, %v7164_v29 }
 0x4aa   :  { %3748 = vmatprep.mubr.f32.mxu1 %v6966_v48 }
 0x4ac   :  { %4376 = vmatpush1.bf16.msra.mxu0 %v4375_v44  ;;  %4468 = vmatpush1.bf16.msra.mxu1 %v4467_v35  ;;  %v7125_v35 = vld [vmem:[#allocation28_spill] sm:$0xff]  ;;  %v7126_v44 = vld [vmem:[#allocation17_spill] sm:$0xff] }
 0x4ad   :  { %4378 = vmatprep.subr.bf16.mxu0 %v4377_v61  ;;  %4470 = vmatprep.subr.bf16.mxu1 %v4469_v3  ;;  %v7127_v61 = vld [vmem:[#allocation34_spill] sm:$0xff]  ;;  %v7128_v3 = vld [vmem:[#allocation23_spill] sm:$0xff] }
 0x4b0   :  { %4380 = vmatpush1.bf16.msra.mxu0 %v4379_v56  ;;  %4472 = vmatpush1.bf16.msra.mxu1 %v4471_v12  ;;  %v7129_v12 = vld [vmem:[#allocation36_spill] sm:$0xff]  ;;  %v7130_v56 = vld [vmem:[#allocation29_spill] sm:$0xff] }
 0x4b1   :  { %3025 = vmatprep.subr.mxu0 %v6438_v59  ;;  %4474 = vmatprep.subr.bf16.mxu1 %v4473_v30  ;;  %v7131_v30 = vld [vmem:[#allocation37_spill] sm:$0xff] }
 0x4b4   :  { %3028 = vmatpush1.msra.mxu0 %v6468_v8  ;;  %4476 = vmatpush1.bf16.msra.mxu1 %v4475_v53  ;;  %v7132_v53 = vld [vmem:[#allocation30_spill] sm:$0xff] }
 0x4b5   :  { %4382 = vmatprep.subr.bf16.mxu0 %v7120_v52  ;;  %3078 = vmatmul.mubr.f32.vlgmr.msra.gmra.mrb[2].mxu0 %v7121_v6 }
 0x4b6   :  { %4384 = vmatpush1.bf16.msra.mxu0 %v7122_v32  ;;  %3698 = vmatprep.subr.mxu1 %v6484_v7 }
 0x4b7   :  { %4386 = vmatprep.subr.bf16.mxu0 %v7123_v5  ;;  %3166 = vmatprep.mubr.f32.mxu0 %v6966_v48 }
 0x4b8   :  { %3701 = vmatpush1.msra.mxu1 %v6498_v18 }
 0x4b9   :  { %4478 = vmatprep.subr.bf16.mxu1 %v7124_v63  ;;  %3751 = vmatmul.mubr.f32.vlgmr.msra.gmra.mrb[2].mxu1 %v7121_v6  ;;  %v7134_v6 = vld [vmem:[#allocation32_spill] sm:$0xff] }
 0x4ba   :  { %4388 = vmatpush1.bf16.msra.mxu0 %v7125_v35  ;;  %4480 = vmatpush1.bf16.msra.mxu1 %v7126_v44 }
 0x4bb   :  { %4390 = vmatprep.subr.bf16.mxu0 %v7127_v61  ;;  %4482 = vmatprep.subr.bf16.mxu1 %v7128_v3 }
 0x4bc   :  { %3839 = vmatprep.mubr.f32.mxu1 %v6966_v48 }
 0x4be   :  { %4392 = vmatpush1.bf16.msra.mxu0 %v7129_v12  ;;  %4484 = vmatpush1.bf16.msra.mxu1 %v7130_v56 }
 0x4bf   :  { %4394 = vmatprep.subr.bf16.mxu0 %v7131_v30  ;;  %4486 = vmatprep.subr.bf16.mxu1 %v7132_v53 }
 0x4c2   :  { %4396 = vmatpush1.bf16.msra.mxu0 %v7133_v57  ;;  %4488 = vmatpush1.bf16.msra.mxu1 %v7134_v6  ;;  %v7141_v6 = vld [vmem:[#allocation20_spill] sm:$0xff] }
 0x4c3   :  { %3117 = vmatprep.subr.mxu0 %v6393_v46  ;;  %4490 = vmatprep.subr.bf16.mxu1 %v7135_v43  ;;  %v7142_v46 = vand.u32 4294901760, %v6183_v41  ;;  %v7143_v43 = vand.u32 4294901760, %v6263_v31  ;;  %v7147_v41 = vand.u32 4294901760, %v7111_v40  ;;  %v7148_v31 = vand.u32 4294901760, %v6145_v33 }
 0x4c4   :  { %v7154_v33 = vand.u32 4294901760, %v7117_v27  ;;  %v7156_v40 = vand.u32 4294901760, %v7115_v2  ;;  %v7163_v2 = vand.u32 4294901760, %v6409_v49  ;;  %v7170_v49 = vand.u32 4294901760, %v6429_v45  ;;  %v7175_v45 = vld [vmem:[#allocation42_spill] sm:$0xff] }
 0x4c5   :  { %v4401_v62 = vpack.c.bf16 %v7143_v43, %v7142_v46  ;;  %v4403_v10 = vpack.c.bf16 %v7147_v41, %v7146_v19  ;;  %v4497_v43 = vpack.c.bf16 %v7153_v24, %v7152_v54  ;;  %v7168_v19 = vand.u32 4294901760, %v6438_v59  ;;  %v7176_v59 = vld [vmem:[#allocation40_spill] sm:$0xff] }
 0x4c6   :  { %3119 = vmatpush1.msra.mxu0 %v6418_v60  ;;  %4492 = vmatpush1.bf16.msra.mxu1 %v7138_v1  ;;  %v4499_v51 = vpack.c.bf16 %v7157_v9, %v7156_v40 }
 0x4c7   :  { %4398 = vmatprep.subr.bf16.mxu0 %v4397_v11  ;;  %3170 = vmatmul.mubr.f32.vlgmr.msra.gmra.mrb[2].mxu0 %v7141_v6  ;;  %v4405_v11 = vpack.c.bf16 %v7151_v39, %v7150_v4  ;;  %v4089_v4 = vld [vmem:[%s6727_s8] sm:$0xff] }
 0x4c8   :  { %4400 = vmatpush1.bf16.msra.mxu0 %v4399_v13  ;;  %3790 = vmatprep.subr.mxu1 %v6440_v55  ;;  %v7149_v13 = vand.u32 4294901760, %v6162_v0  ;;  %v7155_v0 = vand.u32 4294901760, %v6366_v25  ;;  %v7162_v25 = vand.u32 4294901760, %v6416_v37  ;;  %v7169_v37 = vand.u32 4294901760, %v6452_v23 }
 0x4c9   :  { %4402 = vmatprep.subr.bf16.mxu0 %v4401_v62  ;;  %3294 = vmatprep.mubr.f32.mxu0 %v6966_v48  ;;  %v7160_v62 = vand.u32 4294901760, %v7118_v47  ;;  %v7167_v47 = vand.u32 4294901760, %v6413_v38  ;;  %v7173_v38 = vand.u32 4294901760, %v6498_v18 }
 0x4ca   :  { %3792 = vmatpush1.msra.mxu1 %v6454_v15  ;;  %v4495_v46 = vpack.c.bf16 %v7149_v13, %v7148_v31  ;;  %v4407_v14 = vpack.c.bf16 %v7155_v0, %v7154_v33  ;;  %v4411_v36 = vpack.c.bf16 %v7163_v2, %v7162_v25  ;;  %v4507_v41 = vpack.c.bf16 %v7170_v49, %v7169_v37 }
 0x4cb   :  { %4494 = vmatprep.subr.bf16.mxu1 %v4493_v16  ;;  %3843 = vmatmul.mubr.f32.vlgmr.msra.gmra.mrb[2].mxu1 %v7141_v6  ;;  %v4409_v6 = vpack.c.bf16 %v7159_v50, %v7158_v58  ;;  %v4501_v27 = vpack.c.bf16 %v7161_v22, %v7160_v62  ;;  %v7166_v16 = vand.u32 4294901760, %v6425_v42  ;;  %v7174_v42 = vld [vmem:[#allocation32_spill] sm:$0xff]  ;;  %v4113_v22 = vld [vmem:[%s6719_s0 + $0x18] sm:$0xff] }
 0x4cc   :  { %4404 = vmatpush1.bf16.msra.mxu0 %v4403_v10  ;;  %4496 = vmatpush1.bf16.msra.mxu1 %v4495_v46  ;;  %v4112_v62 = vld [vmem:[%s6719_s0 + $0x10] sm:$0xff] }
 0x4cd   :  { %4406 = vmatprep.subr.bf16.mxu0 %v4405_v11  ;;  %4498 = vmatprep.subr.bf16.mxu1 %v4497_v43  ;;  %v4505_v26 = vpack.c.bf16 %v7167_v47, %v7166_v16 }
 0x4ce   :  { %3967 = vmatprep.mubr.f32.mxu1 %v6966_v48 }
 0x4d0   :  { %4408 = vmatpush1.bf16.msra.mxu0 %v4407_v14  ;;  %4500 = vmatpush1.bf16.msra.mxu1 %v4499_v51  ;;  %v4110_v14 = vld [vmem:[%s6719_s0] sm:$0xff] }
 0x4d1   :  { %4410 = vmatprep.subr.bf16.mxu0 %v4409_v6  ;;  %4502 = vmatprep.subr.bf16.mxu1 %v4501_v27  ;;  %v4111_v6 = vld [vmem:[%s6719_s0 + $0x8] sm:$0xff]  ;;  %s4615_s0 = scalar_lea.vmem %s4133_s18, 512 }
 0x4d2   :  { %p4616_p8 = scmp.ne.s32.totalorder %s4133_s18, %s4615_s0  ;;  %p4621_p10 = scmp.lt.s32.totalorder %s4615_s0, %s4615_s0 }
 0x4d4   :  { %4412 = vmatpush1.bf16.msra.mxu0 %v4411_v36  ;;  %4504 = vmatpush1.bf16.msra.mxu1 %v4503_v34  ;;  %p4622_p11 = por %p4621_p10, %p4620_p9 }
 0x4d5   :  { %3243 = vmatprep.subr.mxu0 %v7168_v19  ;;  %4506 = vmatprep.subr.bf16.mxu1 %v4505_v26 }
 0x4d6   :  { %p4623_p12 = pnand %p4622_p11, %p4616_p8 }
 0x4d8   :  { %3247 = vmatpush1.msra.mxu0 %v7171_v17  ;;  %4508 = vmatpush1.bf16.msra.mxu1 %v4507_v41 }
 0x4d9   :  { %4414 = vmatprep.subr.bf16.mxu0 %v7120_v52  ;;  %3296 = vmatmul.mubr.f32.vlgmr.msra.gmra.mrb[2].mxu0 %v6046_v21 }
 0x4da   :  { %4416 = vmatpush1.bf16.msra.mxu0 %v7122_v32  ;;  %3916 = vmatprep.subr.mxu1 %v7172_v20 }
 0x4db   :  { %4418 = vmatprep.subr.bf16.mxu0 %v7123_v5  ;;  %3384 = vmatprep.mubr.f32.mxu0 %v6966_v48 }
 0x4dc   :  { %3920 = vmatpush1.msra.mxu1 %v7173_v38 }
 0x4dd   :  { %4510 = vmatprep.subr.bf16.mxu1 %v7124_v63  ;;  %3969 = vmatmul.mubr.f32.vlgmr.msra.gmra.mrb[2].mxu1 %v6046_v21 }
 0x4de   :  { %4420 = vmatpush1.bf16.msra.mxu0 %v7125_v35  ;;  %4512 = vmatpush1.bf16.msra.mxu1 %v7126_v44 }
 0x4df   :  { %4422 = vmatprep.subr.bf16.mxu0 %v7127_v61  ;;  %4514 = vmatprep.subr.bf16.mxu1 %v7128_v3 }
 0x4e0   :  { %4057 = vmatprep.mubr.f32.mxu1 %v6966_v48  ;;  %v2714_v48 = vpop.permute.xlu0 %2713 }
 0x4e2   :  { %4424 = vmatpush1.bf16.msra.mxu0 %v7129_v12  ;;  %4516 = vmatpush1.bf16.msra.mxu1 %v7130_v56  ;;  %v4100_v12 = vld [vmem:[%s6728_s9] sm:$0xff] }
 0x4e3   :  { %4426 = vmatprep.subr.bf16.mxu0 %v7131_v30  ;;  %4518 = vmatprep.subr.bf16.mxu1 %v7132_v53 }
 0x4e6   :  { %4428 = vmatpush1.bf16.msra.mxu0 %v7133_v57  ;;  %4520 = vmatpush1.bf16.msra.mxu1 %v7174_v42 }
 0x4e7   :  { %3335 = vmatprep.subr.mxu0 %v7175_v45  ;;  %4522 = vmatprep.subr.bf16.mxu1 %v7176_v59 }
 0x4ea   :  { %3337 = vmatpush1.msra.mxu0 %v6418_v60  ;;  %4524 = vmatpush1.bf16.msra.mxu1 %v7138_v1 }
 0x4eb   :  { %3386 = vmatmul.mubr.f32.vlgmr.msra.gmra.mrb[2].mxu0 %v6046_v21  ;;  %4008 = vmatprep.subr.mxu1 %v6440_v55 }
 0x4ee   :  { %4010 = vmatpush1.msra.mxu1 %v6454_v15 }
 0x4ef   :  { %4059 = vmatmul.mubr.f32.vlgmr.msra.gmra.mrb[2].mxu1 %v6046_v21 }
 0x5be   :  { %v3387_v23 = vpop.f32.mrb[2].mxu0 }
 0x5bf   :  { %v4529_v8 = vadd.f32 %v3387_v23, %v2714_v48  ;;  %v3389_v7 = vpop.f32.mrb[3].mxu0 }
 0x5c0   :  { %v4530_v18 = vadd.f32 %v3389_v7, %v2714_v48 }
 0x5c1   :  { %v4070_v57 = vmul.f32 %v4529_v8, %v4529_v8 }
 0x5c2   :  { %v4071_v52 = vmul.f32 %v4530_v18, %v4530_v18  ;;  %v4060_v32 = vpop.f32.mrb[2].mxu1  ;;  %v4065_v5 = vadd.f32 %v4530_v18, %v4529_v8 }
 0x5c3   :  { %v4531_v60 = vadd.f32 %v4060_v32, %v2714_v48  ;;  %v4062_v63 = vpop.f32.mrb[3].mxu1 }
 0x5c4   :  { %v4532_v1 = vadd.f32 %v4062_v63, %v2714_v48  ;;  %v4074_v35 = vadd.f32 %v4071_v52, %v4070_v57 }
 0x5c5   :  { %v4066_v44 = vadd.f32 %v4531_v60, %v4065_v5  ;;  %v4072_v61 = vmul.f32 %v4531_v60, %v4531_v60 }
 0x5c6   :  { %v4073_v55 = vmul.f32 %v4532_v1, %v4532_v1 }
 0x5c7   :  { %v4067_v3 = vadd.f32 %v4532_v1, %v4066_v44  ;;  %v4075_v15 = vadd.f32 %v4074_v35, %v4072_v61 }
 0x5c9   :  { %4068 = vadd.xlane.f32.xlu1 %v4067_v3  ;;  %v4076_v21 = vadd.f32 %v4075_v15, %v4073_v55 }
 0x5cb   :  { %4077 = vadd.xlane.f32.xlu0 %v4076_v21 }
 0x5da   :  { %4103 = vperm.xlu1 %4588, %v4100_v12  }
 0x656   :  { %v4069_v56 = vpop.xlane.xlu1 %4068 }
 0x657   :  { %v4079_v30 = vmul.f32 0.001953125, %v4069_v56 }
 0x658   :  { %v4078_v53 = vpop.xlane.xlu0 %4077 }
 0x659   :  { %v4080_v10 = vmul.f32 0.001953125, %v4078_v53  ;;  %v4081_v31 = vmul.f32 %v4079_v30, %v4079_v30  ;;  %v4085_v54 = vsub.f32 %v4529_v8, %v4079_v30  ;;  %v4086_v24 = vsub.f32 %v4530_v18, %v4079_v30 }
 0x65a   :  { %v4087_v43 = vsub.f32 %v4531_v60, %v4079_v30  ;;  %v4088_v33 = vsub.f32 %v4532_v1, %v4079_v30  ;;  %v4104_v50 = vpop.permute.xlu1 %4103 }
 0x65b   :  { %v4082_v13 = vsub.f32 %v4080_v10, %v4081_v31 }
 0x65d   :  { %v4083_v46 = vadd.f32 1e-05, %v4082_v13 }
 0x65f   :  { %4591 = vrsqrt.f32 %v4083_v46 }
 0x669   :  { %v4592_v39 = vpop.eup %4591 }
 0x66a   :  { %v4090_v11 = vmul.f32 %v4592_v39, %v4089_v4 }
 0x66c   :  { %4093 = vperm.xlu0 %4587, %v4090_v11  }
 0x6eb   :  { %v4094_v0 = vpop.permute.xlu0 %4093 }
 0x6ec   :  { %v4096_v40 = vmul.f32 %v4094_v0, %v4085_v54  ;;  %v4097_v9 = vmul.f32 %v4094_v0, %v4086_v24  ;;  %v4098_v51 = vmul.f32 %v4094_v0, %v4087_v43  ;;  %v4099_v58 = vmul.f32 %v4094_v0, %v4088_v33 }
 0x6ee   :  { %v4106_v27 = vadd.f32 %v4104_v50, %v4096_v40  ;;  %v4107_v25 = vadd.f32 %v4104_v50, %v4097_v9  ;;  %v4108_v2 = vadd.f32 %v4104_v50, %v4098_v51  ;;  %v4109_v36 = vadd.f32 %v4104_v50, %v4099_v58 }
 0x6f0   :  { %v4114_v29 = vadd.f32 %v4110_v14, %v4106_v27  ;;  %v4115_v28 = vadd.f32 %v4111_v6, %v4107_v25  ;;  %v4116_v34 = vadd.f32 %v4112_v62, %v4108_v2  ;;  %v4117_v16 = vadd.f32 %v4113_v22, %v4109_v36 }
 0x6f2   :  { %v4118_v47 = vmax.f32 %v4114_v29, 0.0  ;;  %v4119_v26 = vmax.f32 %v4115_v28, 0.0  ;;  %v4120_v19 = vmax.f32 %v4116_v34, 0.0  ;;  %v4121_v37 = vmax.f32 %v4117_v16, 0.0 }
 0x6f4   :  { %4122 = vst [vmem:[#allocation7] sm:$0xff] %v4118_v47  ;;  %4123 = vst [vmem:[#allocation7 + $0x8] sm:$0xff] %v4119_v26 }
 0x6f5   :  { %4124 = vst [vmem:[#allocation7 + $0x10] sm:$0xff] %v4120_v19  ;;  %4125 = vst [vmem:[#allocation7 + $0x18] sm:$0xff] %v4121_v37 }
 0x6f6   :  { %4626 = shalt.err (!%p4623_p12)
}
 0x6f7   :  { %s4627_s21 = scalar_lea.hbm %s6729_s10, 512 }
 0x6f8   :  { %p4628_p13 = scmp.ne.s32.totalorder %s6729_s10, %s4627_s21  ;;  %p4631_p0 = scmp.lt.u32.totalorder %s4627_s21, %s6729_s10 }
 0x6fa   :  { %p4633_p1 = pnand %p4631_p0, %p4628_p13 }
 0x6fc   :  { %4636 = shalt.err (!%p4633_p1)
}
 0x6fd   :  { %4135 = dma.vmem_to_hbm [thread:$0]  %s4133_s18, 512, %s6729_s10, [#allocation6]  }
 0x6fe   :  { %4639 = dma.done.wait [#allocation6], 512  }
 0x6ff   :  { %4640 = vsyncadd [#allocation6], 4294966784 }
 0x700   :  { %4139 = vsyncpa [#allocation5], 1 }
 0x701   :  { %4140 = vsyncpa [#allocation6], 1 }

</bundles_post_ra>
